<compile_context>
chip_gen: v7x
topology: tpu7x:2x2x1
jax: 0.10.0
libtpu: 0.0.40
codegen_flags: <defaults>
</compile_context>

<pallas_src>
import functools

import jax
import jax.numpy as jnp
from jax.experimental import pallas as pl
from jax.experimental.pallas import tpu as pltpu


# ------------------------------- kernel ---------------------------------------

def _iterative_model_kernel(
    ids_ref,             # (TB, 2)      int32  [team1_id, team2_id]
    t_ref, b1_ref,       # (2*NTP, H1)  bf16,  (1, H1) f32   (embedding (x) W1 fold)
    w2_ref, b2_ref,      # (H1, H2)     bf16,  (1, H2) f32   (BN1 affine folded in)
    w3_ref, b3_ref,      # (H2, H3)     bf16,  (1, H3) f32   (BN2 affine folded in)
    wh_ref, bh_ref,      # (H3, HP)     bf16,  (1, HP) f32   (fused win|info1|info2 heads)
    out_ref,             # (TB, HP)     bf16   lane-dense fused head output
):
    slope = jnp.float32(0.01)

    def leaky(x):
        return jnp.maximum(x, slope * x)          # LeakyReLU as a single VPU max

    # ---- fused embedding gather + weight-normed layer 1 -----------------------
    # t_ref rows are [team_embs @ W1[:te] ; team_embs @ W1[te:]] (zero-padded to
    # a sublane multiple), so  h1 = T1[id1] + T2[id2] + b1  via a one-hot matmul.
    ids = ids_ref[...]                                            # (TB, 2) int32
    id1 = ids[:, 0:1]
    id2 = ids[:, 1:2]
    tb = ids.shape[0]
    k2 = t_ref.shape[0]                                           # 2 * NTP
    ntp = k2 // 2
    col = jax.lax.broadcasted_iota(jnp.int32, (tb, k2), 1)
    sel = jnp.where(col < ntp, id1, id2 + ntp)
    onehot = jnp.where(col == sel, 1.0, 0.0).astype(jnp.bfloat16)  # (TB, 2*NTP)

    h = jnp.dot(onehot, t_ref[...], preferred_element_type=jnp.float32) + b1_ref[...]
    h = leaky(h).astype(jnp.bfloat16)

    # Linear 2 (weight-normed, BN1-folded) -> LeakyReLU
    h = jnp.dot(h, w2_ref[...], preferred_element_type=jnp.float32) + b2_ref[...]
    h = leaky(h).astype(jnp.bfloat16)

    # Linear 3 (weight-normed, BN2-folded) -> LeakyReLU
    h = jnp.dot(h, w3_ref[...], preferred_element_type=jnp.float32) + b3_ref[...]
    h = leaky(h).astype(jnp.bfloat16)

    # Fused heads [win (1) | team1_info | team2_info | pad] + in-kernel sigmoid
    # on lane 0 (EUP is idle; selecting lane 0 is a cheap VPU where).
    heads = jnp.dot(h, wh_ref[...], preferred_element_type=jnp.float32) + bh_ref[...]
    sig = 1.0 / (1.0 + jnp.exp(-heads))
    lane = jax.lax.broadcasted_iota(jnp.int32, heads.shape, 1)
    heads = jnp.where(lane == 0, sig, heads)
    out_ref[...] = heads.astype(out_ref.dtype)


# ------------------------------- wrapper --------------------------------------

def _pick_tile_b(batch):
    """Fill the MXU M dim (128 v5e / 256 v6e+v7x) but keep >=2 grid steps (v7x)."""
    half = (batch + 1) // 2
    half_up = ((half + 127) // 128) * 128
    return int(max(128, min(256, half_up)))


def iterative_model_forward(team1_ids, team2_ids, kparams, *, tile_b=None):
    """IterativeModel forward. Returns (team1_win, team1_info, team2_info)."""
    num_info = kparams["num_info"]                         # static Python int
    B = team1_ids.shape[0]
    if tile_b is None:
        tile_b = _pick_tile_b(B)

    # Only wrapper-side data movement: stack ids and pad the batch (tiny int32
    # array).  Embedding gather/concat, all matmuls and the sigmoid are in-kernel.
    ids = jnp.stack([team1_ids, team2_ids], axis=1).astype(jnp.int32)   # (B, 2)
    n_tiles = pl.cdiv(B, tile_b)
    b_pad = n_tiles * tile_b
    if b_pad != B:
        ids = jnp.pad(ids, ((0, b_pad - B), (0, 0)))

    K2, H1 = kparams["t_emb_w1"].shape
    H2 = kparams["w2"].shape[1]
    H3 = kparams["w3"].shape[1]
    HP = kparams["w_heads"].shape[1]                       # padded head width (128)

    def rep(shape):
        # Replicated weight/bias: same block every grid step.
        # TODO(synk): pipeline_mode=pl.Buffered(1) would drop the redundant second
        # buffer for these invariant blocks; VMEM impact here is negligible.
        return pl.BlockSpec(shape, lambda i: (0,) * len(shape))

    in_specs = [
        pl.BlockSpec((tile_b, 2), lambda i: (i, 0)),       # team ids
        rep((K2, H1)), rep((1, H1)),
        rep((H1, H2)), rep((1, H2)),
        rep((H2, H3)), rep((1, H3)),
        rep((H3, HP)), rep((1, HP)),
    ]
    out_specs = pl.BlockSpec((tile_b, HP), lambda i: (i, 0))
    out_shape = jax.ShapeDtypeStruct((b_pad, HP), jnp.bfloat16)   # lane-dense, bf16 writeback

    heads = pl.pallas_call(
        _iterative_model_kernel,
        grid_spec=pl.GridSpec(grid=(n_tiles,), in_specs=in_specs, out_specs=out_specs),
        out_shape=out_shape,
        compiler_params=pltpu.CompilerParams(dimension_semantics=("parallel",)),
    )(
        ids,
        kparams["t_emb_w1"], kparams["b1"],
        kparams["w2"], kparams["b2"],
        kparams["w3"], kparams["b3"],
        kparams["w_heads"], kparams["b_heads"],
    )

    heads = heads[:B].astype(jnp.float32)                  # drop batch pad, back to f32
    win = heads[:, 0]                                      # sigmoid already applied in-kernel
    info1 = heads[:, 1:1 + num_info]
    info2 = heads[:, 1 + num_info:1 + 2 * num_info]
    return win, info1, info2


# ------------------------ deterministic parameter setup ------------------------

def _weight_norm_fold(v, g):
    """PyTorch weight_norm (dim=0): W[i,:] = g[i] * v[i,:] / ||v[i,:]||.  v: (out, in)."""
    norm = jnp.sqrt(jnp.sum(v * v, axis=1, keepdims=True))
    return v * (g[:, None] / norm)


def _bn_fold(gamma, beta, mean, var, eps=1e-5):
    s = gamma / jnp.sqrt(var + eps)
    t = beta - mean * s
    return s[None, :], t[None, :]


def make_params(key, num_team, num_info=14, team_emb_size=32, model_emb_size=64):
    """Reference (f32, un-fused) parameters in PyTorch-equivalent semantics."""
    H1, H2, H3 = model_emb_size * 6, model_emb_size * 4, model_emb_size * 2
    D_in = team_emb_size * 2
    ks = jax.random.split(key, 24)
    k = iter(ks)

    def lin(kw, kb, out_d, in_d, scale=0.05):
        w = jax.random.normal(kw, (out_d, in_d), jnp.float32) * scale  # PyTorch layout (out, in)
        b = jax.random.normal(kb, (out_d,), jnp.float32) * scale
        return w, b

    params = {}
    params["team_embs"] = jax.random.normal(next(k), (num_team, team_emb_size), jnp.float32)

    # weight-normed MLP linears: fold g * v/||v|| then transpose to (in, out)
    for name, (in_d, out_d) in {"1": (D_in, H1), "2": (H1, H2), "3": (H2, H3)}.items():
        v, b = lin(next(k), next(k), out_d, in_d)
        g = 1.0 + 0.1 * jax.random.normal(next(k), (out_d,), jnp.float32)
        w_eff = _weight_norm_fold(v, g)
        params[f"w{name}"] = w_eff.T                      # (in, out)
        params[f"b{name}"] = b[None, :]                   # (1, out)

    # BatchNorm1d (eval mode) folded to scale/shift
    for name, d in {"1": H1, "2": H2}.items():
        gamma = 1.0 + 0.1 * jax.random.normal(next(k), (d,), jnp.float32)
        beta = 0.1 * jax.random.normal(next(k), (d,), jnp.float32)
        mean = 0.1 * jax.random.normal(next(k), (d,), jnp.float32)
        var = jnp.abs(1.0 + 0.1 * jax.random.normal(next(k), (d,), jnp.float32))
        s, t = _bn_fold(gamma, beta, mean, var)
        params[f"bn{name}_scale"] = s
        params[f"bn{name}_shift"] = t

    # output heads (plain Linear)
    wwin, bwin = lin(next(k), next(k), 1, H3)
    params["wwin"], params["bwin"] = wwin.T, bwin[None, :]
    wt1, bt1 = lin(next(k), next(k), num_info, H3)
    params["wt1"], params["bt1"] = wt1.T, bt1[None, :]
    wt2, bt2 = lin(next(k), next(k), num_info, H3)
    params["wt2"], params["bt2"] = wt2.T, bt2[None, :]
    return params


def prepare_kernel_params(p, num_info):
    """Fold embeddings through layer 1, BN affines into the next layer, fuse+pad heads."""
    bf16 = jnp.bfloat16
    num_team, te = p["team_embs"].shape

    # Fold the (tiny) embedding table through weight-normed layer 1:
    #   h1 = [E[id1] | E[id2]] @ W1 + b1 = (E @ W1[:te])[id1] + (E @ W1[te:])[id2] + b1
    t_top = p["team_embs"] @ p["w1"][:te]                 # (num_team, H1)
    t_bot = p["team_embs"] @ p["w1"][te:]                 # (num_team, H1)
    ntp = ((num_team + 7) // 8) * 8                       # pad rows to a sublane multiple
    row_pad = ((0, ntp - num_team), (0, 0))
    t_emb_w1 = jnp.concatenate(
        [jnp.pad(t_top, row_pad), jnp.pad(t_bot, row_pad)], axis=0)   # (2*ntp, H1)

    # fold BN1 (s1, sh1) into layer 2: (leaky*s1 + sh1) @ W2 + b2 = leaky @ (s1[:,None]*W2) + (sh1@W2 + b2)
    s1, sh1 = p["bn1_scale"][0], p["bn1_shift"][0]
    w2 = s1[:, None] * p["w2"]
    b2 = p["b2"] + (sh1 @ p["w2"])[None, :]

    # fold BN2 (s2, sh2) into layer 3
    s2, sh2 = p["bn2_scale"][0], p["bn2_shift"][0]
    w3 = s2[:, None] * p["w3"]
    b3 = p["b3"] + (sh2 @ p["w3"])[None, :]

    # fuse heads [win | info1 | info2] and zero-pad to a multiple of 128 lanes
    w_heads = jnp.concatenate([p["wwin"], p["wt1"], p["wt2"]], axis=1)   # (H3, 1+2*num_info)
    b_heads = jnp.concatenate([p["bwin"], p["bt1"], p["bt2"]], axis=1)
    n_head = w_heads.shape[1]
    hp = ((n_head + 127) // 128) * 128
    w_heads = jnp.pad(w_heads, ((0, 0), (0, hp - n_head)))
    b_heads = jnp.pad(b_heads, ((0, 0), (0, hp - n_head)))

    return {
        "t_emb_w1": t_emb_w1.astype(bf16), "b1": p["b1"],
        "w2": w2.astype(bf16),             "b2": b2,
        "w3": w3.astype(bf16),             "b3": b3,
        "w_heads": w_heads.astype(bf16),   "b_heads": b_heads,
        "num_info": int(num_info),
    }


def reference_forward(team1_ids, team2_ids, p):
    """Pure-JAX f32 reference (un-fused, un-folded) for a correctness check."""
    e1 = jnp.take(p["team_embs"], team1_ids, axis=0)
    e2 = jnp.take(p["team_embs"], team2_ids, axis=0)
    h = jnp.concatenate([e1, e2], axis=1)
    leaky = lambda x: jnp.where(x > 0, x, 0.01 * x)
    h = leaky(h @ p["w1"] + p["b1"]) * p["bn1_scale"] + p["bn1_shift"]
    h = leaky(h @ p["w2"] + p["b2"]) * p["bn2_scale"] + p["bn2_shift"]
    h = leaky(h @ p["w3"] + p["b3"])
    win = jax.nn.sigmoid(h @ p["wwin"] + p["bwin"]).reshape(-1)
    return win, h @ p["wt1"] + p["bt1"], h @ p["wt2"] + p["bt2"]


if __name__ == "__main__":
    key = jax.random.PRNGKey(0)
    kp, k1, k2 = jax.random.split(key, 3)

    num_team = 10
    num_info = 14
    batch = 256          # 2 grid steps at tile_b=128 -> both v7x TensorCores get work

    ref_params = make_params(kp, num_team=num_team, num_info=num_info)
    kernel_params = prepare_kernel_params(ref_params, num_info)

    team1_ids = jax.random.randint(k1, (batch,), 0, num_team, dtype=jnp.int32)
    team2_ids = jax.random.randint(k2, (batch,), 0, num_team, dtype=jnp.int32)

    fwd = jax.jit(functools.partial(iterative_model_forward, kparams=kernel_params))
    win, info1, info2 = fwd(team1_ids, team2_ids)
    jax.block_until_ready((win, info1, info2))

    # sanity check against pure-JAX f32 reference (bf16 weights/output -> looser tolerance)
    r_win, r_i1, r_i2 = reference_forward(team1_ids, team2_ids, ref_params)
    assert win.shape == (batch,)
    assert info1.shape == (batch, num_info) and info2.shape == (batch, num_info)
    assert jnp.allclose(win, r_win, atol=5e-2, rtol=5e-2)
    assert jnp.allclose(info1, r_i1, atol=5e-2, rtol=5e-2)
    assert jnp.allclose(info2, r_i2, atol=5e-2, rtol=5e-2)

    print("KERNEL_OK")
</pallas_src>

<mosaic_0001>
module attributes {stable_mosaic.version = 11 : i64} {
  func.func @_iterative_model_kernel(%arg0: i32, %arg1: memref<128x2xi32, #tpu.memory_space<vmem>>, %arg2: memref<32x384xbf16, #tpu.memory_space<vmem>>, %arg3: memref<1x384xf32, #tpu.memory_space<vmem>>, %arg4: memref<384x256xbf16, #tpu.memory_space<vmem>>, %arg5: memref<1x256xf32, #tpu.memory_space<vmem>>, %arg6: memref<256x128xbf16, #tpu.memory_space<vmem>>, %arg7: memref<1x128xf32, #tpu.memory_space<vmem>>, %arg8: memref<128x128xbf16, #tpu.memory_space<vmem>>, %arg9: memref<1x128xf32, #tpu.memory_space<vmem>>, %arg10: memref<128x128xbf16, #tpu.memory_space<vmem>>) attributes {dimension_semantics = [#tpu.dimension_semantics<parallel>], iteration_bounds = array<i64: 2>, scalar_prefetch = 0 : i64, scratch_operands = 0 : i64, tpu.core_type = #tpu.core_type<tc>, window_params = [{transform_indices = @transform_0, window_bounds = array<i64: 128, 2>}, {pipeline_mode = #tpu.pipeline_mode<synchronous>, transform_indices = @transform_1, window_bounds = array<i64: 32, 384>}, {pipeline_mode = #tpu.pipeline_mode<synchronous>, transform_indices = @transform_2, window_bounds = array<i64: 1, 384>}, {pipeline_mode = #tpu.pipeline_mode<synchronous>, transform_indices = @transform_3, window_bounds = array<i64: 384, 256>}, {pipeline_mode = #tpu.pipeline_mode<synchronous>, transform_indices = @transform_4, window_bounds = array<i64: 1, 256>}, {pipeline_mode = #tpu.pipeline_mode<synchronous>, transform_indices = @transform_5, window_bounds = array<i64: 256, 128>}, {pipeline_mode = #tpu.pipeline_mode<synchronous>, transform_indices = @transform_6, window_bounds = array<i64: 1, 128>}, {pipeline_mode = #tpu.pipeline_mode<synchronous>, transform_indices = @transform_7, window_bounds = array<i64: 128, 128>}, {pipeline_mode = #tpu.pipeline_mode<synchronous>, transform_indices = @transform_8, window_bounds = array<i64: 1, 128>}, {transform_indices = @transform_9, window_bounds = array<i64: 128, 128>}]} {
    %c0 = arith.constant 0 : index
    %c0_0 = arith.constant 0 : index
    %0 = vector.load %arg1[%c0, %c0_0] : memref<128x2xi32, #tpu.memory_space<vmem>>, vector<128x2xi32>
    %1 = vector.extract_strided_slice %0 {offsets = [0, 0], sizes = [128, 1], strides = [1, 1]} : vector<128x2xi32> to vector<128x1xi32>
    %2 = vector.extract_strided_slice %0 {offsets = [0, 1], sizes = [128, 1], strides = [1, 1]} : vector<128x2xi32> to vector<128x1xi32>
    %3 = tpu.iota {dimensions = array<i32: 1>} : vector<128x32xi32>
    %c16_i32 = arith.constant 16 : i32
    %4 = vector.broadcast %c16_i32 : i32 to vector<128x32xi32>
    %5 = arith.cmpi slt, %3, %4 : vector<128x32xi32>
    %c16_i32_1 = arith.constant 16 : i32
    %6 = vector.broadcast %c16_i32_1 : i32 to vector<128x1xi32>
    %7 = arith.addi %2, %6 : vector<128x1xi32>
    %8 = vector.shape_cast %1 : vector<128x1xi32> to vector<128x1xi32>
    %9 = vector.broadcast %8 : vector<128x1xi32> to vector<128x32xi32>
    %10 = vector.shape_cast %7 : vector<128x1xi32> to vector<128x1xi32>
    %11 = vector.broadcast %10 : vector<128x1xi32> to vector<128x32xi32>
    %12 = arith.select %5, %9, %11 : vector<128x32xi1>, vector<128x32xi32>
    %13 = arith.cmpi eq, %3, %12 : vector<128x32xi32>
    %cst = arith.constant 1.000000e+00 : f32
    %cst_2 = arith.constant 0.000000e+00 : f32
    %14 = vector.broadcast %cst : f32 to vector<128x32xf32>
    %15 = vector.broadcast %cst_2 : f32 to vector<128x32xf32>
    %16 = arith.select %13, %14, %15 : vector<128x32xi1>, vector<128x32xf32>
    %17 = arith.truncf %16 : vector<128x32xf32> to vector<128x32xbf16>
    %c0_3 = arith.constant 0 : index
    %c0_4 = arith.constant 0 : index
    %18 = vector.load %arg2[%c0_3, %c0_4] : memref<32x384xbf16, #tpu.memory_space<vmem>>, vector<32x384xbf16>
    %cst_5 = arith.constant dense<0.000000e+00> : vector<128x384xf32>
    %19 = tpu.matmul %17, %18, %cst_5 {dimension_numbers = #tpu.dot_dimension_numbers<[1], [0], [0], [1], [0, 0, 1, 1], [], []>} : vector<128x32xbf16>, vector<32x384xbf16>, vector<128x384xf32> -> vector<128x384xf32>
    %c0_6 = arith.constant 0 : index
    %c0_7 = arith.constant 0 : index
    %20 = vector.load %arg3[%c0_6, %c0_7] : memref<1x384xf32, #tpu.memory_space<vmem>>, vector<1x384xf32>
    %21 = vector.broadcast %20 : vector<1x384xf32> to vector<128x384xf32>
    %22 = arith.addf %19, %21 : vector<128x384xf32>
    %cst_8 = arith.constant 0.00999999977 : f32
    %23 = vector.broadcast %cst_8 : f32 to vector<128x384xf32>
    %24 = arith.mulf %23, %22 : vector<128x384xf32>
    %25 = arith.maximumf %22, %24 : vector<128x384xf32>
    %26 = arith.truncf %25 : vector<128x384xf32> to vector<128x384xbf16>
    %c0_9 = arith.constant 0 : index
    %c0_10 = arith.constant 0 : index
    %27 = vector.load %arg4[%c0_9, %c0_10] : memref<384x256xbf16, #tpu.memory_space<vmem>>, vector<384x256xbf16>
    %cst_11 = arith.constant dense<0.000000e+00> : vector<128x256xf32>
    %28 = tpu.matmul %26, %27, %cst_11 {dimension_numbers = #tpu.dot_dimension_numbers<[1], [0], [0], [1], [0, 0, 1, 1], [], []>} : vector<128x384xbf16>, vector<384x256xbf16>, vector<128x256xf32> -> vector<128x256xf32>
    %c0_12 = arith.constant 0 : index
    %c0_13 = arith.constant 0 : index
    %29 = vector.load %arg5[%c0_12, %c0_13] : memref<1x256xf32, #tpu.memory_space<vmem>>, vector<1x256xf32>
    %30 = vector.broadcast %29 : vector<1x256xf32> to vector<128x256xf32>
    %31 = arith.addf %28, %30 : vector<128x256xf32>
    %cst_14 = arith.constant 0.00999999977 : f32
    %32 = vector.broadcast %cst_14 : f32 to vector<128x256xf32>
    %33 = arith.mulf %32, %31 : vector<128x256xf32>
    %34 = arith.maximumf %31, %33 : vector<128x256xf32>
    %35 = arith.truncf %34 : vector<128x256xf32> to vector<128x256xbf16>
    %c0_15 = arith.constant 0 : index
    %c0_16 = arith.constant 0 : index
    %36 = vector.load %arg6[%c0_15, %c0_16] : memref<256x128xbf16, #tpu.memory_space<vmem>>, vector<256x128xbf16>
    %cst_17 = arith.constant dense<0.000000e+00> : vector<128x128xf32>
    %37 = tpu.matmul %35, %36, %cst_17 {dimension_numbers = #tpu.dot_dimension_numbers<[1], [0], [0], [1], [0, 0, 1, 1], [], []>} : vector<128x256xbf16>, vector<256x128xbf16>, vector<128x128xf32> -> vector<128x128xf32>
    %c0_18 = arith.constant 0 : index
    %c0_19 = arith.constant 0 : index
    %38 = vector.load %arg7[%c0_18, %c0_19] : memref<1x128xf32, #tpu.memory_space<vmem>>, vector<1x128xf32>
    %39 = vector.broadcast %38 : vector<1x128xf32> to vector<128x128xf32>
    %40 = arith.addf %37, %39 : vector<128x128xf32>
    %cst_20 = arith.constant 0.00999999977 : f32
    %41 = vector.broadcast %cst_20 : f32 to vector<128x128xf32>
    %42 = arith.mulf %41, %40 : vector<128x128xf32>
    %43 = arith.maximumf %40, %42 : vector<128x128xf32>
    %44 = arith.truncf %43 : vector<128x128xf32> to vector<128x128xbf16>
    %c0_21 = arith.constant 0 : index
    %c0_22 = arith.constant 0 : index
    %45 = vector.load %arg8[%c0_21, %c0_22] : memref<128x128xbf16, #tpu.memory_space<vmem>>, vector<128x128xbf16>
    %cst_23 = arith.constant dense<0.000000e+00> : vector<128x128xf32>
    %46 = tpu.matmul %44, %45, %cst_23 {dimension_numbers = #tpu.dot_dimension_numbers<[1], [0], [0], [1], [0, 0, 1, 1], [], []>} : vector<128x128xbf16>, vector<128x128xbf16>, vector<128x128xf32> -> vector<128x128xf32>
    %c0_24 = arith.constant 0 : index
    %c0_25 = arith.constant 0 : index
    %47 = vector.load %arg9[%c0_24, %c0_25] : memref<1x128xf32, #tpu.memory_space<vmem>>, vector<1x128xf32>
    %48 = vector.broadcast %47 : vector<1x128xf32> to vector<128x128xf32>
    %49 = arith.addf %46, %48 : vector<128x128xf32>
    %cst_26 = arith.constant 0.000000e+00 : f32
    %50 = vector.broadcast %cst_26 : f32 to vector<128x128xf32>
    %51 = arith.subf %50, %49 : vector<128x128xf32>
    %52 = math.exp %51 : vector<128x128xf32>
    %cst_27 = arith.constant 1.000000e+00 : f32
    %53 = vector.broadcast %cst_27 : f32 to vector<128x128xf32>
    %54 = arith.addf %53, %52 : vector<128x128xf32>
    %cst_28 = arith.constant 1.000000e+00 : f32
    %55 = vector.broadcast %cst_28 : f32 to vector<128x128xf32>
    %56 = arith.divf %55, %54 : vector<128x128xf32>
    %57 = tpu.iota {dimensions = array<i32: 1>} : vector<128x128xi32>
    %c0_i32 = arith.constant 0 : i32
    %58 = vector.broadcast %c0_i32 : i32 to vector<128x128xi32>
    %59 = arith.cmpi eq, %57, %58 : vector<128x128xi32>
    %60 = arith.select %59, %56, %49 : vector<128x128xi1>, vector<128x128xf32>
    %61 = arith.truncf %60 : vector<128x128xf32> to vector<128x128xbf16>
    %c0_29 = arith.constant 0 : index
    %c0_30 = arith.constant 0 : index
    %62 = vector.load %arg10[%c0_29, %c0_30] : memref<128x128xbf16, #tpu.memory_space<vmem>>, vector<128x128xbf16>
    tpu.vector_store %arg10[%c0_29, %c0_30], %61 {strides = array<i32>} : memref<128x128xbf16, #tpu.memory_space<vmem>>, vector<128x128xbf16>,
    return
  }
  func.func @transform_0(%arg0: i32) -> (i32, i32) {
    %c0_i32 = arith.constant 0 : i32
    %c0_i32_0 = arith.constant 0 : i32
    return %arg0, %c0_i32 : i32, i32
  }
  func.func @transform_1(%arg0: i32) -> (i32, i32) {
    %c0_i32 = arith.constant 0 : i32
    %c0_i32_0 = arith.constant 0 : i32
    %c0_i32_1 = arith.constant 0 : i32
    return %c0_i32, %c0_i32_0 : i32, i32
  }
  func.func @transform_2(%arg0: i32) -> (i32, i32) {
    %c0_i32 = arith.constant 0 : i32
    %c0_i32_0 = arith.constant 0 : i32
    %c0_i32_1 = arith.constant 0 : i32
    return %c0_i32, %c0_i32_0 : i32, i32
  }
  func.func @transform_3(%arg0: i32) -> (i32, i32) {
    %c0_i32 = arith.constant 0 : i32
    %c0_i32_0 = arith.constant 0 : i32
    %c0_i32_1 = arith.constant 0 : i32
    return %c0_i32, %c0_i32_0 : i32, i32
  }
  func.func @transform_4(%arg0: i32) -> (i32, i32) {
    %c0_i32 = arith.constant 0 : i32
    %c0_i32_0 = arith.constant 0 : i32
    %c0_i32_1 = arith.constant 0 : i32
    return %c0_i32, %c0_i32_0 : i32, i32
  }
  func.func @transform_5(%arg0: i32) -> (i32, i32) {
    %c0_i32 = arith.constant 0 : i32
    %c0_i32_0 = arith.constant 0 : i32
    %c0_i32_1 = arith.constant 0 : i32
    return %c0_i32, %c0_i32_0 : i32, i32
  }
  func.func @transform_6(%arg0: i32) -> (i32, i32) {
    %c0_i32 = arith.constant 0 : i32
    %c0_i32_0 = arith.constant 0 : i32
    %c0_i32_1 = arith.constant 0 : i32
    return %c0_i32, %c0_i32_0 : i32, i32
  }
  func.func @transform_7(%arg0: i32) -> (i32, i32) {
    %c0_i32 = arith.constant 0 : i32
    %c0_i32_0 = arith.constant 0 : i32
    %c0_i32_1 = arith.constant 0 : i32
    return %c0_i32, %c0_i32_0 : i32, i32
  }
  func.func @transform_8(%arg0: i32) -> (i32, i32) {
    %c0_i32 = arith.constant 0 : i32
    %c0_i32_0 = arith.constant 0 : i32
    %c0_i32_1 = arith.constant 0 : i32
    return %c0_i32, %c0_i32_0 : i32, i32
  }
  func.func @transform_9(%arg0: i32) -> (i32, i32) {
    %c0_i32 = arith.constant 0 : i32
    %c0_i32_0 = arith.constant 0 : i32
    return %arg0, %c0_i32 : i32, i32
  }
}

</mosaic_0001>

<bundles_post_ra>
// kernel: iterative_model_forward.1
= control target key start
LH: loop header
LB: loop body
LE: loop exit
PB: predicated region body
PF: predicated region fallthrough
CT: control target
= control target key end

     0   :  { %s2899_s30 = smov 0   ;;  %s3631_s0 = inlined_call_operand.vmem [shape: s32[256,2], index: 0, kind: input, shape index: {}]   ;;  %s3632_s1 = inlined_call_operand.vmem [shape: bf16[32,384], index: 1, kind: input, shape index: {}]   ;;  %s3633_s2 = inlined_call_operand.vmem [shape: f32[1,384], index: 2, kind: input, shape index: {}]   ;;  %s3634_s3 = inlined_call_operand.vmem [shape: bf16[384,256], index: 3, kind: input, shape index: {}]   ;;  %s3635_s4 = inlined_call_operand.vmem [shape: f32[1,256], index: 4, kind: input, shape index: {}]   ;;  %s3636_s5 = inlined_call_operand.vmem [shape: bf16[256,128], index: 5, kind: input, shape index: {}]   ;;  %s3637_s6 = inlined_call_operand.vmem [shape: f32[1,128], index: 6, kind: input, shape index: {}]   ;;  %s3638_s7 = inlined_call_operand.vmem [shape: bf16[128,128], index: 7, kind: input, shape index: {}]   ;;  %s3639_s8 = inlined_call_operand.vmem [shape: f32[1,128], index: 8, kind: input, shape index: {}]   ;;  %s3640_s9 = inlined_call_operand.vmem [shape: bf16[256,128], index: 9, kind: output, shape index: {}]  }
   0x1 LB: > { %s2231_s10 = sadd.s32 4294967295, %s2844_s30   ;;  %p2235_p0 = scmp.ge.s32.totalorder %s2844_s30, 1  ;;  %s2844_s30 = sphi %s2899_s30, %s19_s30  }
   0x2   : > { %p288_p1 = scmp.lt.s32.totalorder %s2844_s30, 3 }
   0x4   : > { %p289_p2 = pnand %p2235_p0, %p288_p1 }
   0x5   : > { %s2236_s11 = sshll.u32 (!%p289_p2), %s2231_s10, 4  ;;  %v2846_v0 = vmov (!%p289_p2), 0   ;;  %v2847_v5 = vmov (!%p289_p2), 1   ;;  %v2670_v8 = vld [vmem:[%s3632_s1 + $0x4] ss:$12 sps:$4 sm:$0xff] (!%p289_p2)   ;;  %v353_v41 = vlaneseq (!%p289_p2)  ;;  %v2848_v51 = vmov (!%p289_p2), 0.0  }
   0x6   : > { %292 = sbr.rel (%p289_p2) target bundleno = 1224 (0x4c8), region = 56  ;;  %2651 = vset.pattern.permute.xlu1 (!%p289_p2), %v2846_v0  ;;  %2650 = vset.pattern.permute.xlu0 (!%p289_p2), %v2846_v0  ;;  %p325_p3 = scmp.lt.s32.totalorder (!%p289_p2), %s2236_s11, 31  ;;  %v2672_v9 = vld [vmem:[%s3632_s1] ss:$12 sps:$4 sm:$0xff] (!%p289_p2)   ;;  %v2673_v11 = vld [vmem:[%s3632_s1 + $0x1c] ss:$12 sps:$4 sm:$0xff] (!%p289_p2)  }
   0x7   : > { %638 = vmatprep.mubr.bf16.mxu0 (!%p289_p2), %v2846_v0  ;;  %606 = vmatprep.subr.bf16.mxu0 (!%p289_p2), %v2670_v8  ;;  %v2675_v12 = vld [vmem:[%s3632_s1 + $0x8] ss:$12 sps:$4 sm:$0xff] (!%p289_p2)   ;;  %v2676_v15 = vld [vmem:[%s3632_s1 + $0x18] ss:$12 sps:$4 sm:$0xff] (!%p289_p2)   ;;  %v2677_v17 = vld [vmem:[%s3632_s1 + $0x20] ss:$12 sps:$4 sm:$0xff] (!%p289_p2)  }
   0x8   : > { %607 = vmatpush1.bf16.msra.mxu0 (!%p289_p2), %v2672_v9  ;;  %2507 = vmatprep.subr.bf16.mxu1 (!%p289_p2), %v2675_v12  ;;  %v2680_v40 = vld [vmem:[%s3634_s3 + $0x4] ss:$8 sps:$4 sm:$0xff] (!%p289_p2)   ;;  %v2974_v42 = vand.u32 (!%p289_p2), 127, %v353_v41  ;;  %vm581_vm3 = vcmask (!%p289_p2), 261120   ;;  %v2678_v54 = vld [vmem:[%s3634_s3] ss:$8 sps:$4 sm:$0xff] (!%p289_p2)  }
   0x9   : > { %608 = vmatprep.subr.bf16.mxu0 (!%p289_p2), %v2673_v11  ;;  %2508 = vmatpush3.bf16.msra.mxu1 (!%p289_p2), %v2675_v12  ;;  %v2683_v58 = vld [vmem:[%s3634_s3 + $0x14] ss:$8 sps:$4 sm:$0xff] (!%p289_p2)   ;;  %v2681_v63 = vld [vmem:[%s3634_s3 + $0x10] ss:$8 sps:$4 sm:$0xff] (!%p289_p2)   ;;  %v2692_v11 = vld [vmem:[%s3634_s3 + $0x44] ss:$8 sps:$4 sm:$0xff] (!%p289_p2)  }
   0xa   : > { %2509 = vmatprep.subr.bf16.mxu1 (!%p289_p2), %v2677_v17  ;;  %vm355_vm0 = vcmp.lt.s32.totalorder (!%p289_p2), %v2974_v42, 16  ;;  %v2687_v9 = vld [vmem:[%s3634_s3 + $0x30] ss:$8 sps:$4 sm:$0xff] (!%p289_p2)  }
   0xc   : > { %609 = vmatpush1.bf16.msra.mxu0 (!%p289_p2), %v2676_v15 }
   0xd   : > { %s3642_s11 = smov (!%p325_p3, %s2236_s11), 31  ;;  %2510 = vmatpush3.bf16.msra.mxu1 %v2677_v17  ;;  %1236 = vmatprep.subr.bf16.mxu0 %v2680_v40 }
   0xe   : > { %s2237_s12 = sshll.u32 %s3642_s11, 3  ;;  %s2239_s28 = sshll.u32 %s3642_s11, 2 }
   0xf   : > { %s2916_s15 = scalar_lea.vmem %s3631_s0, %s2237_s12  ;;  %s3551_s12 = scalar_lea.vmem %s3640_s9, %s2239_s28 }
  0x10   : > { %v340_v1 = vld [vmem:[%s2916_s15 + $0x18] sm:$0xff]  ;;  %v337_v2 = vld [vmem:[%s2916_s15] sm:$0xff]  ;;  %v338_v4 = vld [vmem:[%s2916_s15 + $0x8] sm:$0xff] }
  0x11   : > { %382 = vperm.xlu1 %2651, %v340_v1   ;;  %373 = vperm.xlu0 %2650, %v337_v2   ;;  %v356_v3 = vadd.s32 16, %v337_v2  ;;  %v357_v6 = vadd.s32 16, %v338_v4  ;;  %v339_v7 = vld [vmem:[%s2916_s15 + $0x10] sm:$0xff]  ;;  %v359_v13 = vadd.s32 16, %v340_v1  ;;  %v342_v16 = vld [vmem:[%s2916_s15 + $0x28] sm:$0xff]  ;;  %v341_v18 = vld [vmem:[%s2916_s15 + $0x20] sm:$0xff] }
  0x12   : > { %v343_v10 = vld [vmem:[%s2916_s15 + $0x30] sm:$0xff]  ;;  %v358_v14 = vadd.s32 16, %v339_v7  ;;  %v344_v21 = vld [vmem:[%s2916_s15 + $0x38] sm:$0xff]  ;;  %v360_v22 = vadd.s32 16, %v341_v18  ;;  %v361_v23 = vadd.s32 16, %v342_v16  ;;  %v346_v26 = vld [vmem:[%s2916_s15 + $0x48] sm:$0xff] }
  0x13   : > { %v362_v19 = vadd.s32 16, %v343_v10  ;;  %v347_v20 = vld [vmem:[%s2916_s15 + $0x50] sm:$0xff]  ;;  %v363_v24 = vadd.s32 16, %v344_v21  ;;  %v345_v27 = vld [vmem:[%s2916_s15 + $0x40] sm:$0xff]  ;;  %v350_v28 = vld [vmem:[%s2916_s15 + $0x68] sm:$0xff]  ;;  %v365_v31 = vadd.s32 16, %v346_v26 }
  0x14   : > { %v366_v25 = vadd.s32 16, %v347_v20  ;;  %v364_v29 = vadd.s32 16, %v345_v27  ;;  %v351_v30 = vld [vmem:[%s2916_s15 + $0x70] sm:$0xff]  ;;  %v348_v33 = vld [vmem:[%s2916_s15 + $0x58] sm:$0xff]  ;;  %v349_v35 = vld [vmem:[%s2916_s15 + $0x60] sm:$0xff]  ;;  %v369_v37 = vadd.s32 16, %v350_v28 }
  0x15   : > { %2652 = vset.pattern.permute.xlu1 %v2847_v5  ;;  %376 = vperm.xlu0 %2650, %v338_v4   ;;  %v370_v32 = vadd.s32 16, %v351_v30  ;;  %v367_v34 = vadd.s32 16, %v348_v33  ;;  %v368_v36 = vadd.s32 16, %v349_v35  ;;  %v352_v38 = vld [vmem:[%s2916_s15 + $0x78] sm:$0xff]  ;;  %v2686_v2 = vld [vmem:[%s3634_s3 + $0x24] ss:$8 sps:$4 sm:$0xff]  }
  0x16   : > { %421 = vperm.xlu1 %2652, %v356_v3   ;;  %v371_v39 = vadd.s32 16, %v352_v38 }
  0x19   : > { %379 = vperm.xlu0 %2650, %v339_v7  }
  0x1a   : > { %424 = vperm.xlu1 %2652, %v357_v6   ;;  %v2689_v6 = vld [vmem:[%s3634_s3 + $0x34] ss:$8 sps:$4 sm:$0xff]  }
  0x1d   : > { %2653 = vset.pattern.permute.xlu0 %v2847_v5 }
  0x1e   : > { %427 = vperm.xlu0 %2653, %v358_v14   ;;  %430 = vperm.xlu1 %2652, %v359_v13   ;;  %v2690_v14 = vld [vmem:[%s3634_s3 + $0x40] ss:$8 sps:$4 sm:$0xff]  }
  0x22   : > { %2654 = vset.pattern.permute.xlu1 %v2846_v0  ;;  %439 = vperm.xlu0 %2653, %v362_v19  }
  0x23   : > { %385 = vperm.xlu1 %2654, %v341_v18   ;;  %v2695_v18 = vld [vmem:[%s3634_s3 + $0x54] ss:$8 sps:$4 sm:$0xff]  }
  0x26   : > { %2657 = vset.pattern.permute.xlu0 %v2846_v0 }
  0x27   : > { %2655 = vset.pattern.permute.xlu1 %v2847_v5  ;;  %388 = vperm.xlu0 %2657, %v342_v16  }
  0x28   : > { %433 = vperm.xlu1 %2655, %v360_v22   ;;  %v2693_v22 = vld [vmem:[%s3634_s3 + $0x50] ss:$8 sps:$4 sm:$0xff]  }
  0x2b   : > { %391 = vperm.xlu0 %2657, %v343_v10  }
  0x2c   : > { %436 = vperm.xlu1 %2655, %v361_v23   ;;  %v2698_v23 = vld [vmem:[%s3634_s3 + $0x64] ss:$8 sps:$4 sm:$0xff]  }
  0x2f   : > { %400 = vperm.xlu0 %2657, %v346_v26   ;;  %v2701_v26 = vld [vmem:[%s3634_s3 + $0x74] ss:$8 sps:$4 sm:$0xff]  }
  0x30   : > { %2656 = vset.pattern.permute.xlu1 %v2846_v0 }
  0x31   : > { %394 = vperm.xlu1 %2656, %v344_v21  }
  0x33   : > { %2662 = vset.pattern.permute.xlu0 %v2847_v5 }
  0x34   : > { %451 = vperm.xlu0 %2662, %v366_v25  }
  0x35   : > { %2658 = vset.pattern.permute.xlu1 %v2847_v5 }
  0x36   : > { %442 = vperm.xlu1 %2658, %v363_v24   ;;  %v2696_v24 = vld [vmem:[%s3634_s3 + $0x60] ss:$8 sps:$4 sm:$0xff]  }
  0x38   : > { %2663 = vset.pattern.permute.xlu0 %v2846_v0 }
  0x39   : > { %403 = vperm.xlu0 %2663, %v347_v20  }
  0x3a   : > { %2659 = vset.pattern.permute.xlu1 %v2846_v0 }
  0x3b   : > { %397 = vperm.xlu1 %2659, %v345_v27  }
  0x3d   : > { %412 = vperm.xlu0 %2663, %v350_v28  }
  0x3f   : > { %2660 = vset.pattern.permute.xlu1 %v2847_v5 }
  0x40   : > { %445 = vperm.xlu1 %2660, %v364_v29  }
  0x41   : > { %415 = vperm.xlu0 %2663, %v351_v30   ;;  %v2699_v30 = vld [vmem:[%s3634_s3 + $0x70] ss:$8 sps:$4 sm:$0xff]  }
  0x44   : > { %448 = vperm.xlu1 %2660, %v365_v31  }
  0x45   : > { %2668 = vset.pattern.permute.xlu0 %v2847_v5 }
  0x46   : > { %463 = vperm.xlu0 %2668, %v370_v32   ;;  %v2704_v32 = vld [vmem:[%s3634_s3 + $0x84] ss:$8 sps:$4 sm:$0xff]  }
  0x48   : > { %2661 = vset.pattern.permute.xlu1 %v2846_v0 }
  0x49   : > { %406 = vperm.xlu1 %2661, %v348_v33  }
  0x4d   : > { %2664 = vset.pattern.permute.xlu1 %v2847_v5 }
  0x4e   : > { %454 = vperm.xlu1 %2664, %v367_v34   ;;  %v2702_v34 = vld [vmem:[%s3634_s3 + $0x80] ss:$8 sps:$4 sm:$0xff]  }
  0x52   : > { %2665 = vset.pattern.permute.xlu1 %v2846_v0 }
  0x53   : > { %409 = vperm.xlu1 %2665, %v349_v35  }
  0x57   : > { %2666 = vset.pattern.permute.xlu1 %v2847_v5 }
  0x58   : > { %457 = vperm.xlu1 %2666, %v368_v36   ;;  %v2707_v36 = vld [vmem:[%s3634_s3 + $0x94] ss:$8 sps:$4 sm:$0xff]  }
  0x5c   : > { %460 = vperm.xlu1 %2666, %v369_v37  }
  0x60   : > { %2667 = vset.pattern.permute.xlu1 %v2846_v0 }
  0x61   : > { %418 = vperm.xlu1 %2667, %v352_v38  }
  0x65   : > { %2669 = vset.pattern.permute.xlu1 %v2847_v5  ;;  %v2684_v5 = vld [vmem:[%s3634_s3 + $0x20] ss:$8 sps:$4 sm:$0xff]  }
  0x66   : > { %466 = vperm.xlu1 %2669, %v371_v39   ;;  %v2705_v39 = vld [vmem:[%s3634_s3 + $0x90] ss:$8 sps:$4 sm:$0xff]  }
  0x90   : > { %v383_v43 = vpop.permute.xlu1 %382  ;;  %v374_v44 = vpop.permute.xlu0 %373 }
  0x94   : > { %v377_v45 = vpop.permute.xlu0 %376 }
  0x95   : > { %v422_v46 = vpop.permute.xlu1 %421 }
  0x96   : > { %v468_v47 = vsel %vm355_vm0, %v374_v44, %v422_v46  ;;  %v2708_v46 = vld [vmem:[%s3634_s3 + $0xa0] ss:$8 sps:$4 sm:$0xff]  }
  0x97   : > { %vm484_vm1 = vcmp.eq.s32.totalorder %v2974_v42, %v468_v47 }
  0x98   : > { %v380_v48 = vpop.permute.xlu0 %379  ;;  %v500_v52 = vsel %vm484_vm1, 1.0, %v2848_v51 }
  0x99   : > { %v425_v49 = vpop.permute.xlu1 %424 }
  0x9a   : > { %v469_v50 = vsel %vm355_vm0, %v377_v45, %v425_v49  ;;  %v2713_v49 = vld [vmem:[%s3634_s3 + $0xb4] ss:$8 sps:$4 sm:$0xff]  }
  0x9b   : > { %vm485_vm2 = vcmp.eq.s32.totalorder %v2974_v42, %v469_v50 }
  0x9c   : > { %v501_v53 = vsel %vm485_vm2, 1.0, %v2848_v51 }
  0x9d   : > { %v516_v55 = vpack.c.bf16 %v501_v53, %v500_v52  ;;  %v428_v56 = vpop.permute.xlu0 %427  ;;  %v431_v57 = vpop.permute.xlu1 %430 }
  0x9e   : > { %v470_v59 = vsel %vm355_vm0, %v380_v48, %v428_v56  ;;  %v471_v60 = vsel %vm355_vm0, %v383_v43, %v431_v57  ;;  %v2710_v43 = vld [vmem:[%s3634_s3 + $0xa4] ss:$8 sps:$4 sm:$0xff]   ;;  %v2714_v57 = vld [vmem:[%s3634_s3 + $0xc0] ss:$8 sps:$4 sm:$0xff]  }
  0x9f   : > { %vm486_vm4 = vcmp.eq.s32.totalorder %v2974_v42, %v470_v59  ;;  %vm487_vm5 = vcmp.eq.s32.totalorder %v2974_v42, %v471_v60  ;;  %2246 = vmatmul.mubr.msk.bf16.vlgmr.msra.gmra.mrb[0].mxu0 %vm581_vm3, %v516_v55  ;;  %2511 = vmatprep.mubr.msk.bf16.mxu1 %vm581_vm3, %v516_v55  ;;  %v2711_v55 = vld [vmem:[%s3634_s3 + $0xb0] ss:$8 sps:$4 sm:$0xff]   ;;  %v2716_v56 = vld [vmem:[%s3634_s3 + $0xc4] ss:$8 sps:$4 sm:$0xff]  }
  0xa0   : > { %v502_v61 = vsel %vm486_vm4, 1.0, %v2848_v51  ;;  %v503_v62 = vsel %vm487_vm5, 1.0, %v2848_v51  ;;  %648 = vmatprep.mubr.bf16.mxu0 %v2846_v0  ;;  %1237 = vmatpush1.bf16.msra.mxu0 %v2678_v54 }
  0xa1   : > { %v517_v1 = vpack.c.bf16 %v503_v62, %v502_v61  ;;  %1238 = vmatprep.subr.bf16.mxu0 %v2683_v58  ;;  %v440_v4 = vpop.permute.xlu0 %439 }
  0xa2   : > { %v386_v3 = vpop.permute.xlu1 %385 }
  0xa3   : > { %2512 = vmatmul.mubr.msk.bf16.vlgmr.msra.gmra.mrb[0].mxu1 %vm581_vm3, %v517_v1 }
  0xa4   : > { %1239 = vmatpush1.bf16.msra.mxu0 %v2681_v63 }
  0xa5   : > { %1240 = vmatprep.subr.bf16.mxu0 %v2686_v2 }
  0xa6   : > { %v389_v10 = vpop.permute.xlu0 %388 }
  0xa7   : > { %2247 = vmatmul.mubr.msk.bf16.gmra.mrb[4].mxu0 %vm581_vm3, %v517_v1  ;;  %v434_v7 = vpop.permute.xlu1 %433 }
  0xa8   : > { %v472_v8 = vsel %vm355_vm0, %v386_v3, %v434_v7  ;;  %658 = vmatprep.mubr.bf16.mxu0 %v2846_v0  ;;  %1241 = vmatpush1.bf16.msra.mxu0 %v2684_v5 }
  0xa9   : > { %1242 = vmatprep.subr.bf16.mxu0 %v2689_v6  ;;  %vm488_vm6 = vcmp.eq.s32.totalorder %v2974_v42, %v472_v8 }
  0xaa   : > { %v392_v15 = vpop.permute.xlu0 %391  ;;  %v504_v16 = vsel %vm488_vm6, 1.0, %v2848_v51 }
  0xab   : > { %v437_v12 = vpop.permute.xlu1 %436  ;;  %v474_v21 = vsel %vm355_vm0, %v392_v15, %v440_v4 }
  0xac   : > { %v473_v13 = vsel %vm355_vm0, %v389_v10, %v437_v12  ;;  %1243 = vmatpush1.bf16.msra.mxu0 %v2687_v9  ;;  %vm490_vm8 = vcmp.eq.s32.totalorder %v2974_v42, %v474_v21  ;;  %v2725_v21 = vld [vmem:[%s3634_s3 + $0xf4] ss:$8 sps:$4 sm:$0xff]  }
  0xad   : > { %vm489_vm7 = vcmp.eq.s32.totalorder %v2974_v42, %v473_v13  ;;  %1244 = vmatprep.subr.bf16.mxu0 %v2692_v11  ;;  %v506_v27 = vsel %vm490_vm8, 1.0, %v2848_v51 }
  0xae   : > { %v505_v17 = vsel %vm489_vm7, 1.0, %v2848_v51  ;;  %v401_v35 = vpop.permute.xlu0 %400 }
  0xaf   : > { %v518_v19 = vpack.c.bf16 %v505_v17, %v504_v16 }
  0xb0   : > { %v395_v20 = vpop.permute.xlu1 %394  ;;  %1245 = vmatpush1.bf16.msra.mxu0 %v2690_v14 }
  0xb1   : > { %2248 = vmatmul.mubr.msk.bf16.gmra.mrb[8].mxu0 %vm581_vm3, %v518_v19  ;;  %2515 = vmatprep.mubr.msk.bf16.mxu1 %vm581_vm3, %v518_v19  ;;  %v2717_v19 = vld [vmem:[%s3634_s3 + $0xd0] ss:$8 sps:$4 sm:$0xff]  }
  0xb2   : > { %668 = vmatprep.mubr.bf16.mxu0 %v2846_v0  ;;  %1246 = vmatprep.subr.bf16.mxu0 %v2695_v18  ;;  %v2719_v18 = vld [vmem:[%s3634_s3 + $0xd4] ss:$8 sps:$4 sm:$0xff]  }
  0xb3   : > { %v452_v40 = vpop.permute.xlu0 %451 }
  0xb4   : > { %1247 = vmatpush1.bf16.msra.mxu0 %v2693_v22  ;;  %v2723_v22 = vld [vmem:[%s3634_s3 + $0xf0] ss:$8 sps:$4 sm:$0xff]  }
  0xb5   : > { %v443_v25 = vpop.permute.xlu1 %442  ;;  %1248 = vmatprep.subr.bf16.mxu0 %v2698_v23  ;;  %v2728_v23 = vld [vmem:[%s3634_s3 + $0x104] ss:$8 sps:$4 sm:$0xff]  }
  0xb6   : > { %v475_v28 = vsel %vm355_vm0, %v395_v20, %v443_v25  ;;  %v2720_v20 = vld [vmem:[%s3634_s3 + $0xe0] ss:$8 sps:$4 sm:$0xff]   ;;  %2559 = vmatprep.subr.bf16.mxu1 %v2728_v23  ;;  %v3170_v25 = vld [vmem:[%s3634_s3 + $0x114] ss:$8 sps:$4 sm:$0xff]  }
  0xb7   : > { %vm491_vm9 = vcmp.eq.s32.totalorder %v2974_v42, %v475_v28  ;;  %v3187_v28 = vld [vmem:[%s3634_s3 + $0x120] ss:$8 sps:$4 sm:$0xff]  }
  0xb8   : > { %v507_v29 = vsel %vm491_vm9, 1.0, %v2848_v51  ;;  %1249 = vmatpush1.bf16.msra.mxu0 %v2696_v24  ;;  %v404_v52 = vpop.permute.xlu0 %403  ;;  %v3164_v24 = vld [vmem:[%s3634_s3 + $0x100] ss:$8 sps:$4 sm:$0xff]  }
  0xb9   : > { %v519_v31 = vpack.c.bf16 %v507_v29, %v506_v27  ;;  %1250 = vmatprep.subr.bf16.mxu0 %v2701_v26  ;;  %v478_v54 = vsel %vm355_vm0, %v404_v52, %v452_v40  ;;  %2567 = vmatpush1.bf16.msra.mxu1 %v3164_v24  ;;  %v3175_v26 = vld [vmem:[%s3634_s3 + $0x110] ss:$8 sps:$4 sm:$0xff]   ;;  %v3182_v27 = vld [vmem:[%s3634_s3 + $0x124] ss:$8 sps:$4 sm:$0xff]   ;;  %v3194_v29 = vld [vmem:[%s3634_s3 + $0x134] ss:$8 sps:$4 sm:$0xff]  }
  0xba   : > { %v398_v33 = vpop.permute.xlu1 %397  ;;  %vm494_vm12 = vcmp.eq.s32.totalorder %v2974_v42, %v478_v54  ;;  %2560 = vmatprep.subr.bf16.mxu1 %v3170_v25 }
  0xbb   : > { %2249 = vmatmul.mubr.msk.bf16.gmra.mrb[12].mxu0 %vm581_vm3, %v519_v31  ;;  %2516 = vmatmul.mubr.msk.bf16.gmra.mrb[4].mxu1 %vm581_vm3, %v519_v31  ;;  %v510_v59 = vsel %vm494_vm12, 1.0, %v2848_v51  ;;  %v3206_v31 = vld [vmem:[%s3634_s3 + $0x144] ss:$8 sps:$4 sm:$0xff]  }
  0xbc   : > { %678 = vmatprep.mubr.bf16.mxu0 %v2846_v0  ;;  %1251 = vmatpush1.bf16.msra.mxu0 %v2699_v30  ;;  %v413_v1 = vpop.permute.xlu0 %412  ;;  %v3199_v30 = vld [vmem:[%s3634_s3 + $0x130] ss:$8 sps:$4 sm:$0xff]  }
  0xbd   : > { %1252 = vmatprep.subr.bf16.mxu0 %v2704_v32  ;;  %2568 = vmatpush1.bf16.msra.mxu1 %v3175_v26  ;;  %v3211_v32 = vld [vmem:[%s3634_s3 + $0x140] ss:$8 sps:$4 sm:$0xff]  }
  0xbe   : > { %2561 = vmatprep.subr.bf16.mxu1 %v3182_v27 }
  0xbf   : > { %v446_v37 = vpop.permute.xlu1 %445 }
  0xc0   : > { %v476_v38 = vsel %vm355_vm0, %v398_v33, %v446_v37  ;;  %1253 = vmatpush1.bf16.msra.mxu0 %v2702_v34  ;;  %v416_v4 = vpop.permute.xlu0 %415  ;;  %v3218_v33 = vld [vmem:[%s3634_s3 + $0x154] ss:$8 sps:$4 sm:$0xff]   ;;  %v3223_v34 = vld [vmem:[%s3634_s3 + $0x150] ss:$8 sps:$4 sm:$0xff]  }
  0xc1   : > { %1254 = vmatprep.subr.bf16.mxu0 %v2707_v36  ;;  %vm492_vm10 = vcmp.eq.s32.totalorder %v2974_v42, %v476_v38  ;;  %2569 = vmatpush1.bf16.msra.mxu1 %v3187_v28  ;;  %v3235_v36 = vld [vmem:[%s3634_s3 + $0x160] ss:$8 sps:$4 sm:$0xff]   ;;  %v3242_v37 = vld [vmem:[%s3634_s3 + $0x174] ss:$8 sps:$4 sm:$0xff]   ;;  %v3247_v38 = vld [vmem:[%s3634_s3 + $0x170] ss:$8 sps:$4 sm:$0xff]  }
  0xc2   : > { %v508_v47 = vsel %vm492_vm10, 1.0, %v2848_v51  ;;  %2562 = vmatprep.subr.bf16.mxu1 %v3194_v29 }
  0xc3   : > { %v449_v44 = vpop.permute.xlu1 %448 }
  0xc4   : > { %v477_v45 = vsel %vm355_vm0, %v401_v35, %v449_v44  ;;  %1255 = vmatpush1.bf16.msra.mxu0 %v2705_v39  ;;  %v3230_v35 = vld [vmem:[%s3634_s3 + $0x164] ss:$8 sps:$4 sm:$0xff]   ;;  %v3252_v39 = vshrl.u32 %v353_v41, 7 }
  0xc5   : > { %vm493_vm11 = vcmp.eq.s32.totalorder %v2974_v42, %v477_v45  ;;  %1256 = vmatprep.subr.bf16.mxu0 %v2710_v43  ;;  %v464_v9 = vpop.permute.xlu0 %463  ;;  %2570 = vmatpush1.bf16.msra.mxu1 %v3199_v30  ;;  %v532_v43 = vld [vmem:[%s3633_s2] sm:$0x7] }
  0xc6   : > { %v509_v48 = vsel %vm493_vm11, 1.0, %v2848_v51  ;;  %v482_v12 = vsel %vm355_vm0, %v416_v4, %v464_v9  ;;  %2563 = vmatprep.subr.bf16.mxu1 %v3206_v31  ;;  %v536_v40 = vsub.s32 0, %v3252_v39  ;;  %v540_v44 = vsub.s32 1, %v3252_v39 }
  0xc7   : > { %v520_v50 = vpack.c.bf16 %v509_v48, %v508_v47  ;;  %vm498_vm1 = vcmp.eq.s32.totalorder %v2974_v42, %v482_v12 }
  0xc8   : > { %v407_v53 = vpop.permute.xlu1 %406  ;;  %1257 = vmatpush1.bf16.msra.mxu0 %v2708_v46  ;;  %v514_v15 = vsel %vm498_vm1, 1.0, %v2848_v51  ;;  %v3261_v45 = vrot.slane %v532_v43, %v536_v40  ;;  %v544_v46 = vsub.s32 2, %v3252_v39  ;;  %v3266_v47 = vrot.slane %v532_v43, %v540_v44 }
  0xc9   : > { %2250 = vmatmul.mubr.msk.bf16.gmra.mrb[16].mxu0 %vm581_vm3, %v520_v50  ;;  %2519 = vmatprep.mubr.msk.bf16.mxu1 %vm581_vm3, %v520_v50 }
  0xca   : > { %688 = vmatprep.mubr.bf16.mxu0 %v2846_v0  ;;  %1258 = vmatprep.subr.bf16.mxu0 %v2713_v49  ;;  %v3269_v50 = vrot.slane %v532_v43, %v544_v46 }
  0xcb   : > { %2571 = vmatpush1.bf16.msra.mxu1 %v3211_v32 }
  0xcc   : > { %1259 = vmatpush1.bf16.msra.mxu0 %v2711_v55  ;;  %2564 = vmatprep.subr.bf16.mxu1 %v3218_v33 }
  0xcd   : > { %v455_v58 = vpop.permute.xlu1 %454  ;;  %1260 = vmatprep.subr.bf16.mxu0 %v2716_v56 }
  0xce   : > { %v479_v60 = vsel %vm355_vm0, %v407_v53, %v455_v58 }
  0xcf   : > { %vm495_vm13 = vcmp.eq.s32.totalorder %v2974_v42, %v479_v60  ;;  %2572 = vmatpush1.bf16.msra.mxu1 %v3223_v34 }
  0xd0   : > { %v511_v61 = vsel %vm495_vm13, 1.0, %v2848_v51  ;;  %1261 = vmatpush1.bf16.msra.mxu0 %v2714_v57  ;;  %2565 = vmatprep.subr.bf16.mxu1 %v3230_v35 }
  0xd1   : > { %v521_v62 = vpack.c.bf16 %v511_v61, %v510_v59  ;;  %1262 = vmatprep.subr.bf16.mxu0 %v2719_v18 }
  0xd2   : > { %v410_v63 = vpop.permute.xlu1 %409 }
  0xd3   : > { %2251 = vmatmul.mubr.msk.bf16.gmra.mrb[20].mxu0 %vm581_vm3, %v521_v62  ;;  %2520 = vmatmul.mubr.msk.bf16.gmra.mrb[8].mxu1 %vm581_vm3, %v521_v62 }
  0xd4   : > { %698 = vmatprep.mubr.bf16.mxu0 %v2846_v0  ;;  %1263 = vmatpush1.bf16.msra.mxu0 %v2717_v19 }
  0xd5   : > { %2573 = vmatpush1.bf16.msra.mxu1 %v3235_v36 }
  0xd6   : > { %2566 = vmatprep.subr.bf16.mxu1 %v3242_v37 }
  0xd7   : > { %v458_v2 = vpop.permute.xlu1 %457 }
  0xd8   : > { %v480_v3 = vsel %vm355_vm0, %v410_v63, %v458_v2 }
  0xd9   : > { %vm496_vm14 = vcmp.eq.s32.totalorder %v2974_v42, %v480_v3  ;;  %2574 = vmatpush1.bf16.msra.mxu1 %v3247_v38 }
  0xda   : > { %v512_v7 = vsel %vm496_vm14, 1.0, %v2848_v51 }
  0xdb   : > { %v461_v5 = vpop.permute.xlu1 %460 }
  0xdc   : > { %v481_v6 = vsel %vm355_vm0, %v413_v1, %v461_v5 }
  0xdd   : > { %vm497_vm15 = vcmp.eq.s32.totalorder %v2974_v42, %v481_v6 }
  0xde   : > { %v513_v8 = vsel %vm497_vm15, 1.0, %v2848_v51 }
  0xdf   : > { %v522_v10 = vpack.c.bf16 %v513_v8, %v512_v7 }
  0xe0   : > { %v419_v11 = vpop.permute.xlu1 %418 }
  0xe1   : > { %2252 = vmatmul.mubr.msk.bf16.gmra.mrb[24].mxu0 %vm581_vm3, %v522_v10  ;;  %2523 = vmatprep.mubr.msk.bf16.mxu1 %vm581_vm3, %v522_v10 }
  0xe2   : > { %708 = vmatprep.mubr.bf16.mxu0 %v2846_v0 }
  0xe5   : > { %v467_v13 = vpop.permute.xlu1 %466 }
  0xe6   : > { %v483_v14 = vsel %vm355_vm0, %v419_v11, %v467_v13  ;;  %vm2078_vm0 = vcmp.eq.s32.totalorder %v2974_v42, 0 }
  0xe7   : > { %vm499_vm2 = vcmp.eq.s32.totalorder %v2974_v42, %v483_v14 }
  0xe8   : > { %v515_v16 = vsel %vm499_vm2, 1.0, %v2848_v51  ;;  %v2722_v51 = vld [vmem:[%s3634_s3 + $0xe4] ss:$8 sps:$4 sm:$0xff]  }
  0xe9   : > { %v523_v17 = vpack.c.bf16 %v515_v16, %v514_v15  ;;  %1264 = vmatprep.subr.bf16.mxu0 %v2722_v51 }
  0xea   : > { %1265 = vmatpush1.bf16.msra.mxu0 %v2720_v20 }
  0xeb   : > { %2253 = vmatmul.mubr.msk.bf16.gmra.mrb[28].mxu0 %vm581_vm3, %v523_v17  ;;  %2524 = vmatmul.mubr.msk.bf16.gmra.mrb[12].mxu1 %vm581_vm3, %v523_v17 }
  0xec   : > { %1421 = vmatprep.mubr.bf16.mxu1 %v2846_v0  ;;  %1266 = vmatprep.subr.bf16.mxu0 %v2725_v21 }
  0xee   : > { %1267 = vmatpush1.bf16.msra.mxu0 %v2723_v22 }
  0xef   : > { %1349 = vmatprep.subr.bf16.mxu0 %v2728_v23 }
 0x172   : > { %v640_v41 = vpop.f32.mrb[0].mxu0 }
 0x173   : > { %v641_v48 = vadd.f32 %v640_v41, %v3261_v45  ;;  %v642_v49 = vpop.f32.mrb[1].mxu0 }
 0x174   : > { %v643_v52 = vadd.f32 %v642_v49, %v3266_v47  ;;  %v644_v53 = vpop.f32.mrb[2].mxu0 }
 0x175   : > { %v816_v54 = vmul.f32 0.01, %v641_v48  ;;  %v645_v55 = vadd.f32 %v644_v53, %v3261_v45  ;;  %v646_v56 = vpop.f32.mrb[3].mxu0 }
 0x176   : > { %v817_v57 = vmul.f32 0.01, %v643_v52  ;;  %v647_v58 = vadd.f32 %v646_v56, %v3266_v47  ;;  %v2513_v59 = vpop.f32.mrb[0].mxu1 }
 0x177   : > { %v819_v60 = vmul.f32 0.01, %v645_v55  ;;  %v762_v61 = vadd.f32 %v2513_v59, %v3269_v50  ;;  %v753_v62 = vpop.f32.mrb[1].mxu1  ;;  %v864_v3 = vmax.f32 %v641_v48, %v816_v54 }
 0x178   : > { %v820_v63 = vmul.f32 0.01, %v647_v58  ;;  %v754_v1 = vadd.f32 %v753_v62, %v3269_v50  ;;  %v2514_v2 = vpop.f32.mrb[2].mxu1  ;;  %v865_v8 = vmax.f32 %v643_v52, %v817_v57 }
 0x179   : > { %v867_v4 = vmax.f32 %v645_v55, %v819_v60  ;;  %v824_v5 = vmul.f32 0.01, %v762_v61  ;;  %v765_v6 = vadd.f32 %v2514_v2, %v3269_v50  ;;  %v756_v7 = vpop.f32.mrb[3].mxu1 }
 0x17a   : > { %v868_v9 = vmax.f32 %v647_v58, %v820_v63  ;;  %v818_v10 = vmul.f32 0.01, %v754_v1  ;;  %v757_v11 = vadd.f32 %v756_v7, %v3269_v50  ;;  %v650_v12 = vpop.f32.mrb[4].mxu0 }
 0x17b   : > { %v912_v13 = vpack.c.bf16 %v867_v4, %v864_v3  ;;  %v827_v14 = vmul.f32 0.01, %v765_v6  ;;  %v651_v15 = vadd.f32 %v650_v12, %v3261_v45  ;;  %v652_v16 = vpop.f32.mrb[5].mxu0  ;;  %v872_v20 = vmax.f32 %v762_v61, %v824_v5 }
 0x17c   : > { %v821_v17 = vmul.f32 0.01, %v757_v11  ;;  %v653_v18 = vadd.f32 %v652_v16, %v3266_v47  ;;  %v654_v19 = vpop.f32.mrb[6].mxu0  ;;  %v913_v51 = vpack.c.bf16 %v868_v9, %v865_v8  ;;  %v866_v46 = vmax.f32 %v754_v1, %v818_v10 }
 0x17d   : > { %v875_v21 = vmax.f32 %v765_v6, %v827_v14  ;;  %v822_v22 = vmul.f32 0.01, %v651_v15  ;;  %v655_v23 = vadd.f32 %v654_v19, %v3261_v45  ;;  %v656_v43 = vpop.f32.mrb[7].mxu0 }
 0x17e   : > { %v869_v41 = vmax.f32 %v757_v11, %v821_v17  ;;  %v823_v48 = vmul.f32 0.01, %v653_v18  ;;  %v657_v49 = vadd.f32 %v656_v43, %v3266_v47  ;;  %1268 = vmatprep.mubr.bf16.mxu0 %v913_v51 }
 0x17f   : > { %v825_v52 = vmul.f32 0.01, %v655_v23  ;;  %1269 = vmatmul.mubr.bf16.vlgmr.msra.gmra.mrb[32].mxu0 %v912_v13  ;;  %v3282_v53 = vpack.c.bf16 %v875_v21, %v872_v20  ;;  %v870_v56 = vmax.f32 %v651_v15, %v822_v22 }
 0x180   : > { %v3284_v54 = vpack.c.bf16 %v869_v41, %v866_v46  ;;  %v826_v55 = vmul.f32 0.01, %v657_v49  ;;  %1350 = vmatpush1.bf16.msra.mxu0 %v3164_v24  ;;  %v871_v58 = vmax.f32 %v653_v18, %v823_v48 }
 0x181   : > { %v873_v57 = vmax.f32 %v655_v23, %v825_v52  ;;  %1351 = vmatprep.subr.bf16.mxu0 %v3170_v25 }
 0x182   : > { %v874_v59 = vmax.f32 %v657_v49, %v826_v55 }
 0x183   : > { %v915_v60 = vpack.c.bf16 %v873_v57, %v870_v56 }
 0x184   : > { %v660_v61 = vpop.f32.mrb[8].mxu0  ;;  %v916_v62 = vpack.c.bf16 %v874_v59, %v871_v58  ;;  %1352 = vmatpush1.bf16.msra.mxu0 %v3175_v26 }
 0x185   : > { %v661_v63 = vadd.f32 %v660_v61, %v3261_v45  ;;  %v662_v1 = vpop.f32.mrb[9].mxu0  ;;  %1353 = vmatprep.subr.bf16.mxu0 %v3182_v27 }
 0x186   : > { %v663_v2 = vadd.f32 %v662_v1, %v3266_v47  ;;  %v664_v3 = vpop.f32.mrb[10].mxu0  ;;  %1278 = vmatprep.mubr.bf16.mxu0 %v916_v62 }
 0x187   : > { %v828_v24 = vmul.f32 0.01, %v661_v63  ;;  %v665_v4 = vadd.f32 %v664_v3, %v3261_v45  ;;  %v666_v25 = vpop.f32.mrb[11].mxu0  ;;  %1279 = vmatmul.mubr.bf16.gmra.mrb[36].mxu0 %v915_v60 }
 0x188   : > { %v829_v5 = vmul.f32 0.01, %v663_v2  ;;  %v667_v6 = vadd.f32 %v666_v25, %v3266_v47  ;;  %1354 = vmatpush1.bf16.msra.mxu0 %v3187_v28 }
 0x189   : > { %v831_v26 = vmul.f32 0.01, %v665_v4  ;;  %1355 = vmatprep.subr.bf16.mxu0 %v3194_v29  ;;  %v876_v8 = vmax.f32 %v661_v63, %v828_v24 }
 0x18a   : > { %v832_v7 = vmul.f32 0.01, %v667_v6  ;;  %v877_v9 = vmax.f32 %v663_v2, %v829_v5 }
 0x18b   : > { %v879_v27 = vmax.f32 %v665_v4, %v831_v26 }
 0x18c   : > { %v880_v10 = vmax.f32 %v667_v6, %v832_v7  ;;  %1356 = vmatpush1.bf16.msra.mxu0 %v3199_v30 }
 0x18d   : > { %v918_v11 = vpack.c.bf16 %v879_v27, %v876_v8  ;;  %1357 = vmatprep.subr.bf16.mxu0 %v3206_v31 }
 0x18e   : > { %v670_v12 = vpop.f32.mrb[12].mxu0  ;;  %v2517_v13 = vpop.f32.mrb[4].mxu1  ;;  %v919_v14 = vpack.c.bf16 %v880_v10, %v877_v9 }
 0x18f   : > { %v671_v15 = vadd.f32 %v670_v12, %v3261_v45  ;;  %v778_v28 = vadd.f32 %v2517_v13, %v3269_v50  ;;  %v672_v16 = vpop.f32.mrb[13].mxu0  ;;  %v769_v17 = vpop.f32.mrb[5].mxu1 }
 0x190   : > { %v673_v29 = vadd.f32 %v672_v16, %v3266_v47  ;;  %v770_v18 = vadd.f32 %v769_v17, %v3269_v50  ;;  %v674_v19 = vpop.f32.mrb[14].mxu0  ;;  %v2518_v51 = vpop.f32.mrb[6].mxu1  ;;  %1288 = vmatprep.mubr.bf16.mxu0 %v919_v14  ;;  %1358 = vmatpush1.bf16.msra.mxu0 %v3211_v32 }
 0x191   : > { %v834_v30 = vmul.f32 0.01, %v671_v15  ;;  %v836_v31 = vmul.f32 0.01, %v778_v28  ;;  %v675_v20 = vadd.f32 %v674_v19, %v3261_v45  ;;  %v781_v21 = vadd.f32 %v2518_v51, %v3269_v50  ;;  %v676_v22 = vpop.f32.mrb[15].mxu0  ;;  %v772_v23 = vpop.f32.mrb[7].mxu1  ;;  %1289 = vmatmul.mubr.bf16.gmra.mrb[40].mxu0 %v918_v11  ;;  %1359 = vmatprep.subr.bf16.mxu0 %v3218_v33 }
 0x192   : > { %v835_v43 = vmul.f32 0.01, %v673_v29  ;;  %v830_v46 = vmul.f32 0.01, %v770_v18  ;;  %v677_v41 = vadd.f32 %v676_v22, %v3266_v47  ;;  %v773_v48 = vadd.f32 %v772_v23, %v3269_v50 }
 0x193   : > { %v837_v49 = vmul.f32 0.01, %v675_v20  ;;  %v839_v52 = vmul.f32 0.01, %v781_v21  ;;  %v882_v56 = vmax.f32 %v671_v15, %v834_v30  ;;  %v884_v57 = vmax.f32 %v778_v28, %v836_v31 }
 0x194   : > { %v838_v32 = vmul.f32 0.01, %v677_v41  ;;  %v833_v55 = vmul.f32 0.01, %v773_v48  ;;  %1360 = vmatpush1.bf16.msra.mxu0 %v3223_v34  ;;  %v883_v60 = vmax.f32 %v673_v29, %v835_v43  ;;  %v878_v33 = vmax.f32 %v770_v18, %v830_v46 }
 0x195   : > { %v885_v58 = vmax.f32 %v675_v20, %v837_v49  ;;  %v887_v59 = vmax.f32 %v781_v21, %v839_v52  ;;  %1361 = vmatprep.subr.bf16.mxu0 %v3230_v35 }
 0x196   : > { %v886_v61 = vmax.f32 %v677_v41, %v838_v32  ;;  %v881_v62 = vmax.f32 %v773_v48, %v833_v55 }
 0x197   : > { %v921_v63 = vpack.c.bf16 %v885_v58, %v882_v56  ;;  %v3310_v1 = vpack.c.bf16 %v887_v59, %v884_v57 }
 0x198   : > { %v922_v2 = vpack.c.bf16 %v886_v61, %v883_v60  ;;  %1362 = vmatpush1.bf16.msra.mxu0 %v3235_v36  ;;  %v3313_v3 = vpack.c.bf16 %v881_v62, %v878_v33 }
 0x199   : > { %1363 = vmatprep.subr.bf16.mxu0 %v3242_v37 }
 0x19a   : > { %1298 = vmatprep.mubr.bf16.mxu0 %v922_v2 }
 0x19b   : > { %1299 = vmatmul.mubr.bf16.gmra.mrb[44].mxu0 %v921_v63 }
 0x19c   : > { %v680_v34 = vpop.f32.mrb[16].mxu0  ;;  %1364 = vmatpush1.bf16.msra.mxu0 %v3247_v38 }
 0x19d   : > { %v681_v35 = vadd.f32 %v680_v34, %v3261_v45  ;;  %v682_v24 = vpop.f32.mrb[17].mxu0 }
 0x19e   : > { %v683_v4 = vadd.f32 %v682_v24, %v3266_v47  ;;  %v684_v25 = vpop.f32.mrb[18].mxu0 }
 0x19f   : > { %v840_v5 = vmul.f32 0.01, %v681_v35  ;;  %v685_v6 = vadd.f32 %v684_v25, %v3261_v45  ;;  %v686_v26 = vpop.f32.mrb[19].mxu0 }
 0x1a0   : > { %v841_v36 = vmul.f32 0.01, %v683_v4  ;;  %v687_v7 = vadd.f32 %v686_v26, %v3266_v47 }
 0x1a1   : > { %v843_v8 = vmul.f32 0.01, %v685_v6  ;;  %v888_v27 = vmax.f32 %v681_v35, %v840_v5 }
 0x1a2   : > { %v844_v37 = vmul.f32 0.01, %v687_v7  ;;  %v889_v10 = vmax.f32 %v683_v4, %v841_v36 }
 0x1a3   : > { %v891_v9 = vmax.f32 %v685_v6, %v843_v8 }
 0x1a4   : > { %v892_v11 = vmax.f32 %v687_v7, %v844_v37 }
 0x1a5   : > { %v924_v38 = vpack.c.bf16 %v891_v9, %v888_v27 }
 0x1a6   : > { %v690_v12 = vpop.f32.mrb[20].mxu0  ;;  %v2521_v13 = vpop.f32.mrb[8].mxu1  ;;  %v925_v14 = vpack.c.bf16 %v892_v11, %v889_v10 }
 0x1a7   : > { %v691_v15 = vadd.f32 %v690_v12, %v3261_v45  ;;  %v794_v28 = vadd.f32 %v2521_v13, %v3269_v50  ;;  %v692_v16 = vpop.f32.mrb[21].mxu0  ;;  %v785_v17 = vpop.f32.mrb[9].mxu1 }
 0x1a8   : > { %v693_v29 = vadd.f32 %v692_v16, %v3266_v47  ;;  %v786_v18 = vadd.f32 %v785_v17, %v3269_v50  ;;  %v694_v19 = vpop.f32.mrb[22].mxu0  ;;  %v2522_v51 = vpop.f32.mrb[10].mxu1  ;;  %1308 = vmatprep.mubr.bf16.mxu0 %v925_v14 }
 0x1a9   : > { %v846_v30 = vmul.f32 0.01, %v691_v15  ;;  %v848_v31 = vmul.f32 0.01, %v794_v28  ;;  %v695_v20 = vadd.f32 %v694_v19, %v3261_v45  ;;  %v797_v21 = vadd.f32 %v2522_v51, %v3269_v50  ;;  %v696_v22 = vpop.f32.mrb[23].mxu0  ;;  %v788_v23 = vpop.f32.mrb[11].mxu1  ;;  %1309 = vmatmul.mubr.bf16.gmra.mrb[48].mxu0 %v924_v38 }
 0x1aa   : > { %v847_v43 = vmul.f32 0.01, %v693_v29  ;;  %v842_v46 = vmul.f32 0.01, %v786_v18  ;;  %v697_v41 = vadd.f32 %v696_v22, %v3266_v47  ;;  %v789_v48 = vadd.f32 %v788_v23, %v3269_v50 }
 0x1ab   : > { %v849_v49 = vmul.f32 0.01, %v695_v20  ;;  %v851_v52 = vmul.f32 0.01, %v797_v21  ;;  %v894_v56 = vmax.f32 %v691_v15, %v846_v30  ;;  %v896_v57 = vmax.f32 %v794_v28, %v848_v31 }
 0x1ac   : > { %v850_v32 = vmul.f32 0.01, %v697_v41  ;;  %v845_v55 = vmul.f32 0.01, %v789_v48  ;;  %v895_v60 = vmax.f32 %v693_v29, %v847_v43  ;;  %v890_v33 = vmax.f32 %v786_v18, %v842_v46 }
 0x1ad   : > { %v897_v58 = vmax.f32 %v695_v20, %v849_v49  ;;  %v899_v59 = vmax.f32 %v797_v21, %v851_v52 }
 0x1ae   : > { %v898_v61 = vmax.f32 %v697_v41, %v850_v32  ;;  %v893_v62 = vmax.f32 %v789_v48, %v845_v55 }
 0x1af   : > { %v927_v63 = vpack.c.bf16 %v897_v58, %v894_v56  ;;  %v929_v2 = vpack.c.bf16 %v899_v59, %v896_v57 }
 0x1b0   : > { %v926_v34 = vpack.c.bf16 %v893_v62, %v890_v33  ;;  %v928_v35 = vpack.c.bf16 %v898_v61, %v895_v60 }
 0x1b2   : > { %1318 = vmatprep.mubr.bf16.mxu0 %v928_v35  ;;  %1422 = vmatmul.mubr.bf16.vlgmr.msra.gmra.mrb[16].mxu1 %v926_v34 }
 0x1b3   : > { %1319 = vmatmul.mubr.bf16.gmra.mrb[52].mxu0 %v927_v63  ;;  %1431 = vmatprep.mubr.bf16.mxu1 %v2846_v0 }
 0x1b4   : > { %v700_v24 = vpop.f32.mrb[24].mxu0 }
 0x1b5   : > { %v701_v4 = vadd.f32 %v700_v24, %v3261_v45  ;;  %v702_v25 = vpop.f32.mrb[25].mxu0 }
 0x1b6   : > { %v703_v5 = vadd.f32 %v702_v25, %v3266_v47  ;;  %v704_v6 = vpop.f32.mrb[26].mxu0  ;;  %v2758_v25 = vld [vmem:[%s3636_s5 + $0x60] sm:$0xff]  }
 0x1b7   : > { %v852_v26 = vmul.f32 0.01, %v701_v4  ;;  %v705_v36 = vadd.f32 %v704_v6, %v3261_v45  ;;  %v706_v7 = vpop.f32.mrb[27].mxu0  ;;  %v2760_v6 = vld [vmem:[%s3636_s5 + $0x68] sm:$0xff]  }
 0x1b8   : > { %v853_v8 = vmul.f32 0.01, %v703_v5  ;;  %v707_v37 = vadd.f32 %v706_v7, %v3266_v47  ;;  %v2763_v7 = vld [vmem:[%s3636_s5 + $0x30] sm:$0xff]  }
 0x1b9   : > { %v855_v27 = vmul.f32 0.01, %v705_v36  ;;  %v900_v10 = vmax.f32 %v701_v4, %v852_v26  ;;  %v2757_v4 = vld [vmem:[%s3636_s5 + $0x18] sm:$0xff]   ;;  %v2761_v26 = vld [vmem:[%s3636_s5 + $0x28] sm:$0xff]  }
 0x1ba   : > { %v856_v9 = vmul.f32 0.01, %v707_v37  ;;  %1432 = vmatmul.mubr.bf16.gmra.mrb[20].mxu1 %v929_v2  ;;  %v901_v38 = vmax.f32 %v703_v5, %v853_v8  ;;  %v2759_v5 = vld [vmem:[%s3636_s5 + $0x20] sm:$0xff]   ;;  %v2764_v8 = vld [vmem:[%s3636_s5 + $0x78] sm:$0xff]  }
 0x1bb   : > { %v903_v11 = vmax.f32 %v705_v36, %v855_v27  ;;  %1441 = vmatprep.mubr.bf16.mxu1 %v2846_v0  ;;  %v2762_v36 = vld [vmem:[%s3636_s5 + $0x70] sm:$0xff]   ;;  %v3403_v27 = vld [vmem:[%s3638_s7] sm:$0xff]  }
 0x1bc   : > { %v904_v12 = vmax.f32 %v707_v37, %v856_v9  ;;  %v2765_v37 = vld [vmem:[%s3636_s5 + $0x38] sm:$0xff]  }
 0x1bd   : > { %v930_v13 = vpack.c.bf16 %v903_v11, %v900_v10  ;;  %v984_v10 = vld [vmem:[%s3635_s4] sm:$0x3] }
 0x1be   : > { %v710_v14 = vpop.f32.mrb[28].mxu0  ;;  %v2525_v15 = vpop.f32.mrb[12].mxu1  ;;  %v931_v28 = vpack.c.bf16 %v904_v12, %v901_v38 }
 0x1bf   : > { %v711_v16 = vadd.f32 %v710_v14, %v3261_v45  ;;  %v810_v17 = vadd.f32 %v2525_v15, %v3269_v50  ;;  %v712_v29 = vpop.f32.mrb[29].mxu0  ;;  %v801_v18 = vpop.f32.mrb[13].mxu1  ;;  %v3415_v14 = vrot.slane %v984_v10, %v540_v44 }
 0x1c0   : > { %v713_v19 = vadd.f32 %v712_v29, %v3266_v47  ;;  %v802_v51 = vadd.f32 %v801_v18, %v3269_v50  ;;  %v714_v30 = vpop.f32.mrb[30].mxu0  ;;  %v2526_v31 = vpop.f32.mrb[14].mxu1  ;;  %1328 = vmatprep.mubr.bf16.mxu0 %v931_v28 }
 0x1c1   : > { %v858_v20 = vmul.f32 0.01, %v711_v16  ;;  %v860_v21 = vmul.f32 0.01, %v810_v17  ;;  %v715_v22 = vadd.f32 %v714_v30, %v3261_v45  ;;  %v813_v23 = vadd.f32 %v2526_v31, %v3269_v50  ;;  %v716_v43 = vpop.f32.mrb[31].mxu0  ;;  %v804_v46 = vpop.f32.mrb[15].mxu1  ;;  %1329 = vmatmul.mubr.bf16.gmra.mrb[56].mxu0 %v930_v13 }
 0x1c2   : > { %v859_v41 = vmul.f32 0.01, %v713_v19  ;;  %v854_v48 = vmul.f32 0.01, %v802_v51  ;;  %v717_v49 = vadd.f32 %v716_v43, %v3266_v47  ;;  %v805_v52 = vadd.f32 %v804_v46, %v3269_v50  ;;  %v2750_v47 = vld [vmem:[%s3636_s5 + $0x40] sm:$0xff]  }
 0x1c3   : > { %v861_v32 = vmul.f32 0.01, %v715_v22  ;;  %v863_v55 = vmul.f32 0.01, %v813_v23  ;;  %v906_v58 = vmax.f32 %v711_v16, %v858_v20  ;;  %v908_v59 = vmax.f32 %v810_v17, %v860_v21  ;;  %v2751_v50 = vld [vmem:[%s3636_s5] sm:$0xff]   ;;  %2427 = vmatprep.subr.bf16.mxu1 %v2750_v47 }
 0x1c4   : > { %v862_v56 = vmul.f32 0.01, %v717_v49  ;;  %v857_v57 = vmul.f32 0.01, %v805_v52  ;;  %v907_v45 = vmax.f32 %v713_v19, %v859_v41  ;;  %v902_v61 = vmax.f32 %v802_v51, %v854_v48  ;;  %2428 = vmatpush3.bf16.msra.mxu1 %v2751_v50 }
 0x1c5   : > { %v909_v60 = vmax.f32 %v715_v22, %v861_v32  ;;  %v911_v33 = vmax.f32 %v813_v23, %v863_v55  ;;  %v3411_v13 = vrot.slane %v984_v10, %v536_v40 }
 0x1c6   : > { %v910_v62 = vmax.f32 %v717_v49, %v862_v56  ;;  %v905_v63 = vmax.f32 %v805_v52, %v857_v57 }
 0x1c7   : > { %v933_v2 = vpack.c.bf16 %v909_v60, %v906_v58  ;;  %v935_v34 = vpack.c.bf16 %v911_v33, %v908_v59 }
 0x1c8   : > { %v934_v35 = vpack.c.bf16 %v910_v62, %v907_v45  ;;  %v932_v24 = vpack.c.bf16 %v905_v63, %v902_v61 }
 0x1ca   : > { %1338 = vmatprep.mubr.bf16.mxu0 %v934_v35  ;;  %1442 = vmatmul.mubr.bf16.gmra.mrb[24].mxu1 %v932_v24 }
 0x1cb   : > { %1339 = vmatmul.mubr.bf16.gmra.mrb[60].mxu0 %v933_v2  ;;  %1451 = vmatprep.mubr.bf16.mxu1 %v2846_v0 }
 0x1cc   : > { %1381 = vmatprep.mubr.bf16.mxu0 %v2846_v0 }
 0x1d2   : > { %1452 = vmatmul.mubr.bf16.gmra.mrb[28].mxu1 %v935_v34 }
 0x1d3   : > { %1382 = vmatmul.mubr.bf16.vlgmr.msra.gmra.mrb[32].mxu0 %v3284_v54  ;;  %v2754_v54 = vld [vmem:[%s3636_s5 + $0x50] sm:$0xff]  }
 0x1d4   : > { %1391 = vmatprep.mubr.bf16.mxu0 %v2846_v0 }
 0x1db   : > { %1392 = vmatmul.mubr.bf16.gmra.mrb[36].mxu0 %v3282_v53  ;;  %v2752_v53 = vld [vmem:[%s3636_s5 + $0x48] sm:$0xff]  }
 0x1dc   : > { %1401 = vmatprep.mubr.bf16.mxu0 %v2846_v0  ;;  %2429 = vmatprep.subr.bf16.mxu1 %v2752_v53 }
 0x1e3   : > { %1402 = vmatmul.mubr.bf16.gmra.mrb[40].mxu0 %v3313_v3  ;;  %v2756_v3 = vld [vmem:[%s3636_s5 + $0x58] sm:$0xff]  }
 0x1e4   : > { %1411 = vmatprep.mubr.bf16.mxu0 %v2846_v0  ;;  %v2753_v0 = vld [vmem:[%s3636_s5 + $0x8] sm:$0xff]  }
 0x1e5   : > { %2430 = vmatpush3.bf16.msra.mxu1 %v2753_v0 }
 0x1e6   : > { %2431 = vmatprep.subr.bf16.mxu1 %v2754_v54 }
 0x1eb   : > { %1412 = vmatmul.mubr.bf16.gmra.mrb[44].mxu0 %v3310_v1  ;;  %v2755_v1 = vld [vmem:[%s3636_s5 + $0x10] sm:$0xff]  }
 0x1ec   : > { %2432 = vmatpush3.bf16.msra.mxu1 %v2755_v1 }
 0x1ed   : > { %2433 = vmatprep.subr.bf16.mxu1 %v2756_v3 }
 0x1f0   : > { %2434 = vmatpush3.bf16.msra.mxu1 %v2757_v4 }
 0x1f1   : > { %2435 = vmatprep.subr.bf16.mxu1 %v2758_v25 }
 0x1f4   : > { %2436 = vmatpush3.bf16.msra.mxu1 %v2759_v5 }
 0x1f5   : > { %2437 = vmatprep.subr.bf16.mxu1 %v2760_v6 }
 0x1f8   : > { %2438 = vmatpush3.bf16.msra.mxu1 %v2761_v26 }
 0x1f9   : > { %2439 = vmatprep.subr.bf16.mxu1 %v2762_v36 }
 0x1fc   : > { %2440 = vmatpush3.bf16.msra.mxu1 %v2763_v7 }
 0x1fd   : > { %2441 = vmatprep.subr.bf16.mxu1 %v2764_v8 }
 0x200   : > { %2442 = vmatpush3.bf16.msra.mxu1 %v2765_v37 }
 0x201   : > { %2527 = vmatprep.subr.bf16.mxu1 %v3403_v27 }
 0x27c   : > { %v1310_v9 = vpop.f32.mrb[48].mxu0 }
 0x27d   : > { %v1312_v11 = vpop.f32.mrb[49].mxu0  ;;  %v1311_v15 = vadd.f32 %v1310_v9, %v3411_v13 }
 0x27e   : > { %v1314_v38 = vpop.f32.mrb[50].mxu0  ;;  %v1313_v28 = vadd.f32 %v1312_v11, %v3415_v14 }
 0x27f   : > { %v1316_v12 = vpop.f32.mrb[51].mxu0  ;;  %v1315_v17 = vadd.f32 %v1314_v38, %v3411_v13 }
 0x280   : > { %v1317_v51 = vadd.f32 %v1316_v12, %v3415_v14 }
 0x285   : > { %v1423_v16 = vpop.f32.mrb[16].mxu1 }
 0x286   : > { %v1424_v29 = vadd.f32 %v1423_v16, %v1311_v15  ;;  %v1320_v18 = vpop.f32.mrb[52].mxu0  ;;  %v1425_v19 = vpop.f32.mrb[17].mxu1 }
 0x287   : > { %v1426_v30 = vadd.f32 %v1425_v19, %v1313_v28  ;;  %v1322_v31 = vpop.f32.mrb[53].mxu0  ;;  %v1427_v40 = vpop.f32.mrb[18].mxu1  ;;  %v1321_v49 = vadd.f32 %v1320_v18, %v3411_v13 }
 0x288   : > { %v1478_v20 = vmul.f32 0.01, %v1424_v29  ;;  %v1428_v21 = vadd.f32 %v1427_v40, %v1315_v17  ;;  %v1324_v39 = vpop.f32.mrb[54].mxu0  ;;  %v1429_v44 = vpop.f32.mrb[19].mxu1  ;;  %v1323_v55 = vadd.f32 %v1322_v31, %v3415_v14 }
 0x289   : > { %v1479_v22 = vmul.f32 0.01, %v1426_v30  ;;  %v1430_v23 = vadd.f32 %v1429_v44, %v1317_v51  ;;  %v1326_v43 = vpop.f32.mrb[55].mxu0  ;;  %v1325_v58 = vadd.f32 %v1324_v39, %v3411_v13 }
 0x28a   : > { %v1480_v46 = vmul.f32 0.01, %v1428_v21  ;;  %v1510_v48 = vmax.f32 %v1424_v29, %v1478_v20  ;;  %v1327_v45 = vadd.f32 %v1326_v43, %v3415_v14 }
 0x28b   : > { %v1481_v41 = vmul.f32 0.01, %v1430_v23  ;;  %v1511_v32 = vmax.f32 %v1426_v30, %v1479_v22 }
 0x28c   : > { %v1512_v52 = vmax.f32 %v1428_v21, %v1480_v46 }
 0x28d   : > { %v1513_v56 = vmax.f32 %v1430_v23, %v1481_v41  ;;  %v1433_v57 = vpop.f32.mrb[20].mxu1 }
 0x28e   : > { %v1434_v59 = vadd.f32 %v1433_v57, %v1321_v49  ;;  %v1435_v60 = vpop.f32.mrb[21].mxu1  ;;  %v3424_v33 = vpack.c.bf16 %v1512_v52, %v1510_v48 }
 0x28f   : > { %v1436_v61 = vadd.f32 %v1435_v60, %v1323_v55  ;;  %v1437_v62 = vpop.f32.mrb[22].mxu1  ;;  %v3427_v63 = vpack.c.bf16 %v1513_v56, %v1511_v32 }
 0x290   : > { %v1482_v2 = vmul.f32 0.01, %v1434_v59  ;;  %v1438_v34 = vadd.f32 %v1437_v62, %v1325_v58  ;;  %v1439_v35 = vpop.f32.mrb[23].mxu1 }
 0x291   : > { %v1483_v24 = vmul.f32 0.01, %v1436_v61  ;;  %v1440_v47 = vadd.f32 %v1439_v35, %v1327_v45 }
 0x292   : > { %v1484_v50 = vmul.f32 0.01, %v1438_v34  ;;  %v1514_v0 = vmax.f32 %v1434_v59, %v1482_v2 }
 0x293   : > { %v1485_v53 = vmul.f32 0.01, %v1440_v47  ;;  %v1515_v3 = vmax.f32 %v1436_v61, %v1483_v24 }
 0x294   : > { %v1516_v54 = vmax.f32 %v1438_v34, %v1484_v50  ;;  %v1330_v1 = vpop.f32.mrb[56].mxu0 }
 0x295   : > { %v1517_v4 = vmax.f32 %v1440_v47, %v1485_v53  ;;  %v1332_v25 = vpop.f32.mrb[57].mxu0  ;;  %v1331_v7 = vadd.f32 %v1330_v1, %v3411_v13 }
 0x296   : > { %v1334_v5 = vpop.f32.mrb[58].mxu0  ;;  %v3429_v6 = vpack.c.bf16 %v1516_v54, %v1514_v0  ;;  %v1333_v8 = vadd.f32 %v1332_v25, %v3415_v14 }
 0x297   : > { %v1336_v26 = vpop.f32.mrb[59].mxu0  ;;  %v3431_v36 = vpack.c.bf16 %v1517_v4, %v1515_v3  ;;  %v1335_v9 = vadd.f32 %v1334_v5, %v3411_v13 }
 0x298   : > { %v1337_v12 = vadd.f32 %v1336_v26, %v3415_v14 }
 0x29d   : > { %v1443_v37 = vpop.f32.mrb[24].mxu1 }
 0x29e   : > { %v1444_v10 = vadd.f32 %v1443_v37, %v1331_v7  ;;  %v1340_v11 = vpop.f32.mrb[60].mxu0  ;;  %v1445_v38 = vpop.f32.mrb[25].mxu1 }
 0x29f   : > { %v1446_v15 = vadd.f32 %v1445_v38, %v1333_v8  ;;  %v1342_v28 = vpop.f32.mrb[61].mxu0  ;;  %v1447_v16 = vpop.f32.mrb[26].mxu1  ;;  %v1341_v39 = vadd.f32 %v1340_v11, %v3411_v13 }
 0x2a0   : > { %v1486_v17 = vmul.f32 0.01, %v1444_v10  ;;  %v1448_v29 = vadd.f32 %v1447_v16, %v1335_v9  ;;  %v1344_v18 = vpop.f32.mrb[62].mxu0  ;;  %v1449_v19 = vpop.f32.mrb[27].mxu1  ;;  %v1343_v23 = vadd.f32 %v1342_v28, %v3415_v14 }
 0x2a1   : > { %v1487_v51 = vmul.f32 0.01, %v1446_v15  ;;  %v1450_v30 = vadd.f32 %v1449_v19, %v1337_v12  ;;  %v1346_v31 = vpop.f32.mrb[63].mxu0  ;;  %v1345_v41 = vadd.f32 %v1344_v18, %v3411_v13 }
 0x2a2   : > { %v1488_v40 = vmul.f32 0.01, %v1448_v29  ;;  %v1518_v21 = vmax.f32 %v1444_v10, %v1486_v17  ;;  %v1347_v55 = vadd.f32 %v1346_v31, %v3415_v14 }
 0x2a3   : > { %v1489_v20 = vmul.f32 0.01, %v1450_v30  ;;  %v1519_v22 = vmax.f32 %v1446_v15, %v1487_v51 }
 0x2a4   : > { %v1520_v44 = vmax.f32 %v1448_v29, %v1488_v40  ;;  %v2767_v40 = vld [vmem:[%s3638_s7 + $0x8] sm:$0xff]  }
 0x2a5   : > { %v1521_v43 = vmax.f32 %v1450_v30, %v1489_v20  ;;  %v1453_v46 = vpop.f32.mrb[28].mxu1 }
 0x2a6   : > { %v1454_v48 = vadd.f32 %v1453_v46, %v1341_v39  ;;  %v1383_v49 = vpop.f32.mrb[32].mxu0  ;;  %v1455_v52 = vpop.f32.mrb[29].mxu1  ;;  %v3440_v32 = vpack.c.bf16 %v1520_v44, %v1518_v21 }
 0x2a7   : > { %v2575_v56 = vadd.f32 %v1383_v49, %v3411_v13  ;;  %v1456_v57 = vadd.f32 %v1455_v52, %v1343_v23  ;;  %v1385_v58 = vpop.f32.mrb[33].mxu0  ;;  %v1457_v59 = vpop.f32.mrb[30].mxu1  ;;  %v3444_v60 = vpack.c.bf16 %v1521_v43, %v1519_v22  ;;  %v2768_v43 = vld [vmem:[%s3638_s7 + $0x10] sm:$0xff]  }
 0x2a8   : > { %v1490_v45 = vmul.f32 0.01, %v1454_v48  ;;  %v2576_v61 = vadd.f32 %v1385_v58, %v3415_v14  ;;  %v1458_v62 = vadd.f32 %v1457_v59, %v1345_v41  ;;  %v1387_v2 = vpop.f32.mrb[34].mxu0  ;;  %v1459_v34 = vpop.f32.mrb[31].mxu1 }
 0x2a9   : > { %v1462_v35 = vmul.f32 0.01, %v2575_v56  ;;  %v1491_v24 = vmul.f32 0.01, %v1456_v57  ;;  %v2577_v47 = vadd.f32 %v1387_v2, %v3411_v13  ;;  %v1460_v50 = vadd.f32 %v1459_v34, %v1347_v55  ;;  %v1389_v53 = vpop.f32.mrb[35].mxu0 }
 0x2aa   : > { %v1463_v0 = vmul.f32 0.01, %v2576_v61  ;;  %v1492_v54 = vmul.f32 0.01, %v1458_v62  ;;  %v2578_v1 = vadd.f32 %v1389_v53, %v3415_v14  ;;  %v1522_v25 = vmax.f32 %v1454_v48, %v1490_v45 }
 0x2ab   : > { %v1464_v3 = vmul.f32 0.01, %v2577_v47  ;;  %v1493_v4 = vmul.f32 0.01, %v1460_v50  ;;  %v1494_v7 = vmax.f32 %v2575_v56, %v1462_v35  ;;  %v1523_v8 = vmax.f32 %v1456_v57, %v1491_v24 }
 0x2ac   : > { %v1524_v5 = vmax.f32 %v1458_v62, %v1492_v54  ;;  %v1465_v26 = vmul.f32 0.01, %v2578_v1  ;;  %v1495_v10 = vmax.f32 %v2576_v61, %v1463_v0 }
 0x2ad   : > { %v1496_v37 = vmax.f32 %v2577_v47, %v1464_v3  ;;  %v1525_v9 = vmax.f32 %v1460_v50, %v1493_v4 }
 0x2ae   : > { %v1497_v11 = vmax.f32 %v2578_v1, %v1465_v26  ;;  %v1393_v38 = vpop.f32.mrb[36].mxu0  ;;  %v3449_v12 = vpack.c.bf16 %v1524_v5, %v1522_v25 }
 0x2af   : > { %v1526_v15 = vpack.c.bf16 %v1496_v37, %v1494_v7  ;;  %v2579_v28 = vadd.f32 %v1393_v38, %v3411_v13  ;;  %v1395_v16 = vpop.f32.mrb[37].mxu0  ;;  %v3452_v17 = vpack.c.bf16 %v1525_v9, %v1523_v8 }
 0x2b0   : > { %v2580_v29 = vadd.f32 %v1395_v16, %v3415_v14  ;;  %v1397_v18 = vpop.f32.mrb[38].mxu0  ;;  %v1527_v19 = vpack.c.bf16 %v1497_v11, %v1495_v10 }
 0x2b1   : > { %v1466_v51 = vmul.f32 0.01, %v2579_v28  ;;  %v2581_v30 = vadd.f32 %v1397_v18, %v3411_v13  ;;  %v1399_v31 = vpop.f32.mrb[39].mxu0 }
 0x2b2   : > { %v1467_v20 = vmul.f32 0.01, %v2580_v29  ;;  %v2582_v21 = vadd.f32 %v1399_v31, %v3415_v14  ;;  %1709 = vmatprep.mubr.bf16.mxu1 %v1527_v19 }
 0x2b3   : > { %v1468_v39 = vmul.f32 0.01, %v2581_v30  ;;  %1710 = vmatmul.mubr.bf16.vlgmr.msra.gmra.mrb[32].mxu1 %v1526_v15  ;;  %v1498_v22 = vmax.f32 %v2579_v28, %v1466_v51 }
 0x2b4   : > { %v1469_v44 = vmul.f32 0.01, %v2582_v21  ;;  %2528 = vmatpush3.bf16.msra.mxu1 %v3403_v27  ;;  %v1499_v46 = vmax.f32 %v2580_v29, %v1467_v20 }
 0x2b5   : > { %v1500_v23 = vmax.f32 %v2581_v30, %v1468_v39  ;;  %2529 = vmatprep.subr.bf16.mxu1 %v2767_v40 }
 0x2b6   : > { %v1501_v41 = vmax.f32 %v2582_v21, %v1469_v44  ;;  %v1403_v48 = vpop.f32.mrb[40].mxu0 }
 0x2b7   : > { %v2583_v49 = vadd.f32 %v1403_v48, %v3411_v13  ;;  %v1405_v52 = vpop.f32.mrb[41].mxu0  ;;  %v1528_v55 = vpack.c.bf16 %v1500_v23, %v1498_v22 }
 0x2b8   : > { %v2584_v56 = vadd.f32 %v1405_v52, %v3415_v14  ;;  %v1407_v57 = vpop.f32.mrb[42].mxu0  ;;  %v1529_v58 = vpack.c.bf16 %v1501_v41, %v1499_v46  ;;  %2530 = vmatpush3.bf16.msra.mxu1 %v2767_v40 }
 0x2b9   : > { %v1470_v27 = vmul.f32 0.01, %v2583_v49  ;;  %v2585_v59 = vadd.f32 %v1407_v57, %v3411_v13  ;;  %v1409_v45 = vpop.f32.mrb[43].mxu0  ;;  %2531 = vmatprep.subr.bf16.mxu1 %v2768_v43 }
 0x2ba   : > { %v1471_v61 = vmul.f32 0.01, %v2584_v56  ;;  %v2586_v62 = vadd.f32 %v1409_v45, %v3415_v14  ;;  %1717 = vmatprep.mubr.bf16.mxu1 %v1529_v58 }
 0x2bb   : > { %v1472_v2 = vmul.f32 0.01, %v2585_v59  ;;  %1718 = vmatmul.mubr.bf16.gmra.mrb[36].mxu1 %v1528_v55  ;;  %v1502_v35 = vmax.f32 %v2583_v49, %v1470_v27 }
 0x2bc   : > { %v1473_v34 = vmul.f32 0.01, %v2586_v62  ;;  %2532 = vmatpush3.bf16.msra.mxu1 %v2768_v43  ;;  %v1503_v47 = vmax.f32 %v2584_v56, %v1471_v61 }
 0x2bd   : > { %v1504_v24 = vmax.f32 %v2585_v59, %v1472_v2 }
 0x2be   : > { %v1505_v50 = vmax.f32 %v2586_v62, %v1473_v34  ;;  %v1413_v53 = vpop.f32.mrb[44].mxu0 }
 0x2bf   : > { %v2587_v0 = vadd.f32 %v1413_v53, %v3411_v13  ;;  %v1415_v54 = vpop.f32.mrb[45].mxu0  ;;  %v1530_v1 = vpack.c.bf16 %v1504_v24, %v1502_v35 }
 0x2c0   : > { %v2588_v3 = vadd.f32 %v1415_v54, %v3415_v14  ;;  %v1417_v4 = vpop.f32.mrb[46].mxu0  ;;  %v1531_v25 = vpack.c.bf16 %v1505_v50, %v1503_v47 }
 0x2c1   : > { %v1474_v5 = vmul.f32 0.01, %v2587_v0  ;;  %v2589_v26 = vadd.f32 %v1417_v4, %v3411_v13  ;;  %v1419_v7 = vpop.f32.mrb[47].mxu0  ;;  %v2769_v13 = vld [vmem:[%s3638_s7 + $0x18] sm:$0xff]  }
 0x2c2   : > { %v1475_v8 = vmul.f32 0.01, %v2588_v3  ;;  %v2590_v37 = vadd.f32 %v1419_v7, %v3415_v14  ;;  %1725 = vmatprep.mubr.bf16.mxu1 %v1531_v25  ;;  %2533 = vmatprep.subr.bf16.mxu1 %v2769_v13  ;;  %v2770_v14 = vld [vmem:[%s3638_s7 + $0x20] sm:$0xff]  }
 0x2c3   : > { %v1476_v9 = vmul.f32 0.01, %v2589_v26  ;;  %1726 = vmatmul.mubr.bf16.gmra.mrb[40].mxu1 %v1530_v1  ;;  %v1506_v11 = vmax.f32 %v2587_v0, %v1474_v5 }
 0x2c4   : > { %v1477_v10 = vmul.f32 0.01, %v2590_v37  ;;  %v1507_v15 = vmax.f32 %v2588_v3, %v1475_v8  ;;  %2534 = vmatpush3.bf16.msra.mxu1 %v2769_v13 }
 0x2c5   : > { %v1508_v38 = vmax.f32 %v2589_v26, %v1476_v9  ;;  %2535 = vmatprep.subr.bf16.mxu1 %v2770_v14 }
 0x2c6   : > { %v1509_v28 = vmax.f32 %v2590_v37, %v1477_v10 }
 0x2c7   : > { %v1532_v16 = vpack.c.bf16 %v1508_v38, %v1506_v11 }
 0x2c8   : > { %v1533_v29 = vpack.c.bf16 %v1509_v28, %v1507_v15  ;;  %2536 = vmatpush3.bf16.msra.mxu1 %v2770_v14 }
 0x2ca   : > { %1733 = vmatprep.mubr.bf16.mxu1 %v1533_v29 }
 0x2cb   : > { %1734 = vmatmul.mubr.bf16.gmra.mrb[44].mxu1 %v1532_v16 }
 0x2cc   : > { %1741 = vmatprep.mubr.bf16.mxu1 %v3427_v63  ;;  %v2772_v63 = vld [vmem:[%s3638_s7 + $0x30] sm:$0xff]  }
 0x2d3   : > { %1742 = vmatmul.mubr.bf16.gmra.mrb[48].mxu1 %v3424_v33  ;;  %v2771_v33 = vld [vmem:[%s3638_s7 + $0x28] sm:$0xff]  }
 0x2d4   : > { %1749 = vmatprep.mubr.bf16.mxu1 %v3431_v36  ;;  %2537 = vmatprep.subr.bf16.mxu1 %v2771_v33 }
 0x2d5   : > { %2538 = vmatpush3.bf16.msra.mxu1 %v2771_v33 }
 0x2d6   : > { %2539 = vmatprep.subr.bf16.mxu1 %v2772_v63 }
 0x2d9   : > { %2540 = vmatpush3.bf16.msra.mxu1 %v2772_v63 }
 0x2db   : > { %1750 = vmatmul.mubr.bf16.gmra.mrb[52].mxu1 %v3429_v6  ;;  %v2773_v6 = vld [vmem:[%s3638_s7 + $0x38] sm:$0xff]  }
 0x2dc   : > { %1757 = vmatprep.mubr.bf16.mxu1 %v3444_v60  ;;  %2541 = vmatprep.subr.bf16.mxu1 %v2773_v6 }
 0x2dd   : > { %2542 = vmatpush3.bf16.msra.mxu1 %v2773_v6 }
 0x2e3   : > { %1758 = vmatmul.mubr.bf16.gmra.mrb[56].mxu1 %v3440_v32  ;;  %v3498_v32 = vld [vmem:[%s3637_s6] ss:$0 sm:$0xff] }
 0x2e4   : > { %1765 = vmatprep.mubr.bf16.mxu1 %v3452_v17 }
 0x2eb   : > { %1766 = vmatmul.mubr.bf16.gmra.mrb[60].mxu1 %v3449_v12 }
 0x386   : > { %v2443_v36 = vpop.f32.mrb[32].mxu1 }
 0x387   : > { %v2444_v60 = vpop.f32.mrb[33].mxu1 }
 0x388   : > { %v2445_v12 = vadd.f32 %v2444_v60, %v2443_v36  ;;  %v2446_v17 = vpop.f32.mrb[34].mxu1 }
 0x389   : > { %v2447_v18 = vpop.f32.mrb[35].mxu1 }
 0x38a   : > { %v1712_v19 = vadd.f32 %v2445_v12, %v3498_v32  ;;  %v2448_v51 = vadd.f32 %v2447_v18, %v2446_v17 }
 0x38c   : > { %v1774_v30 = vmul.f32 0.01, %v1712_v19  ;;  %v1715_v31 = vadd.f32 %v2448_v51, %v3498_v32 }
 0x38e   : > { %v1775_v40 = vmul.f32 0.01, %v1715_v31  ;;  %v2449_v20 = vpop.f32.mrb[36].mxu1  ;;  %v1790_v39 = vmax.f32 %v1712_v19, %v1774_v30 }
 0x38f   : > { %v2450_v21 = vpop.f32.mrb[37].mxu1 }
 0x390   : > { %v1791_v44 = vmax.f32 %v1715_v31, %v1775_v40  ;;  %v2451_v22 = vadd.f32 %v2450_v21, %v2449_v20  ;;  %v2452_v23 = vpop.f32.mrb[38].mxu1 }
 0x391   : > { %v2453_v43 = vpop.f32.mrb[39].mxu1 }
 0x392   : > { %v1720_v46 = vadd.f32 %v2451_v22, %v3498_v32  ;;  %v2454_v41 = vadd.f32 %v2453_v43, %v2452_v23  ;;  %v1806_v48 = vpack.c.bf16 %v1791_v44, %v1790_v39 }
 0x394   : > { %v1776_v49 = vmul.f32 0.01, %v1720_v46  ;;  %v1723_v52 = vadd.f32 %v2454_v41, %v3498_v32  ;;  %2543 = vmatprep.mubr.bf16.mxu1 %v1806_v48 }
 0x396   : > { %v1777_v55 = vmul.f32 0.01, %v1723_v52  ;;  %v2455_v56 = vpop.f32.mrb[40].mxu1  ;;  %v1792_v58 = vmax.f32 %v1720_v46, %v1776_v49 }
 0x397   : > { %v2456_v57 = vpop.f32.mrb[41].mxu1 }
 0x398   : > { %v1793_v27 = vmax.f32 %v1723_v52, %v1777_v55  ;;  %v2457_v59 = vadd.f32 %v2456_v57, %v2455_v56  ;;  %v2458_v45 = vpop.f32.mrb[42].mxu1 }
 0x399   : > { %v2459_v61 = vpop.f32.mrb[43].mxu1 }
 0x39a   : > { %v1807_v62 = vpack.c.bf16 %v1793_v27, %v1792_v58  ;;  %v1728_v2 = vadd.f32 %v2457_v59, %v3498_v32  ;;  %v2460_v34 = vadd.f32 %v2459_v61, %v2458_v45 }
 0x39c   : > { %v1778_v35 = vmul.f32 0.01, %v1728_v2  ;;  %v1731_v24 = vadd.f32 %v2460_v34, %v3498_v32  ;;  %2544 = vmatmul.mubr.bf16.vlgmr.msra.gmra.mrb[64].mxu1 %v1807_v62 }
 0x39e   : > { %v1779_v47 = vmul.f32 0.01, %v1731_v24  ;;  %v2461_v50 = vpop.f32.mrb[44].mxu1  ;;  %v1794_v0 = vmax.f32 %v1728_v2, %v1778_v35 }
 0x39f   : > { %v2462_v53 = vpop.f32.mrb[45].mxu1 }
 0x3a0   : > { %v1795_v54 = vmax.f32 %v1731_v24, %v1779_v47  ;;  %v2463_v1 = vadd.f32 %v2462_v53, %v2461_v50  ;;  %v2464_v3 = vpop.f32.mrb[46].mxu1 }
 0x3a1   : > { %v2465_v4 = vpop.f32.mrb[47].mxu1 }
 0x3a2   : > { %v1736_v25 = vadd.f32 %v2463_v1, %v3498_v32  ;;  %v2466_v5 = vadd.f32 %v2465_v4, %v2464_v3  ;;  %v1808_v26 = vpack.c.bf16 %v1795_v54, %v1794_v0  ;;  %v3519_v4 = vld [vmem:[%s3639_s8] ss:$0 sm:$0xff] }
 0x3a4   : > { %v1780_v7 = vmul.f32 0.01, %v1736_v25  ;;  %v1739_v8 = vadd.f32 %v2466_v5, %v3498_v32  ;;  %2547 = vmatprep.mubr.bf16.mxu1 %v1808_v26 }
 0x3a6   : > { %v1781_v37 = vmul.f32 0.01, %v1739_v8  ;;  %v2467_v9 = vpop.f32.mrb[48].mxu1  ;;  %v1796_v11 = vmax.f32 %v1736_v25, %v1780_v7 }
 0x3a7   : > { %v2468_v10 = vpop.f32.mrb[49].mxu1 }
 0x3a8   : > { %v1797_v38 = vmax.f32 %v1739_v8, %v1781_v37  ;;  %v2469_v15 = vadd.f32 %v2468_v10, %v2467_v9  ;;  %v2470_v28 = vpop.f32.mrb[50].mxu1 }
 0x3a9   : > { %v2471_v16 = vpop.f32.mrb[51].mxu1 }
 0x3aa   : > { %v1744_v29 = vadd.f32 %v2469_v15, %v3498_v32  ;;  %v2472_v13 = vadd.f32 %v2471_v16, %v2470_v28  ;;  %v1809_v14 = vpack.c.bf16 %v1797_v38, %v1796_v11 }
 0x3ac   : > { %v1782_v33 = vmul.f32 0.01, %v1744_v29  ;;  %v1747_v63 = vadd.f32 %v2472_v13, %v3498_v32  ;;  %2548 = vmatmul.mubr.bf16.gmra.mrb[68].mxu1 %v1809_v14 }
 0x3ae   : > { %v1783_v6 = vmul.f32 0.01, %v1747_v63  ;;  %v2473_v36 = vpop.f32.mrb[52].mxu1  ;;  %v1798_v12 = vmax.f32 %v1744_v29, %v1782_v33 }
 0x3af   : > { %v2474_v60 = vpop.f32.mrb[53].mxu1 }
 0x3b0   : > { %v1799_v17 = vmax.f32 %v1747_v63, %v1783_v6  ;;  %v2475_v18 = vadd.f32 %v2474_v60, %v2473_v36  ;;  %v2476_v19 = vpop.f32.mrb[54].mxu1 }
 0x3b1   : > { %v2477_v51 = vpop.f32.mrb[55].mxu1 }
 0x3b2   : > { %v1752_v30 = vadd.f32 %v2475_v18, %v3498_v32  ;;  %v2478_v31 = vadd.f32 %v2477_v51, %v2476_v19  ;;  %v1810_v40 = vpack.c.bf16 %v1799_v17, %v1798_v12 }
 0x3b4   : > { %v1784_v20 = vmul.f32 0.01, %v1752_v30  ;;  %v1755_v21 = vadd.f32 %v2478_v31, %v3498_v32  ;;  %2551 = vmatprep.mubr.bf16.mxu1 %v1810_v40 }
 0x3b6   : > { %v1785_v39 = vmul.f32 0.01, %v1755_v21  ;;  %v2479_v44 = vpop.f32.mrb[56].mxu1  ;;  %v1800_v23 = vmax.f32 %v1752_v30, %v1784_v20 }
 0x3b7   : > { %v2480_v22 = vpop.f32.mrb[57].mxu1 }
 0x3b8   : > { %v1801_v43 = vmax.f32 %v1755_v21, %v1785_v39  ;;  %v2481_v46 = vadd.f32 %v2480_v22, %v2479_v44  ;;  %v2482_v41 = vpop.f32.mrb[58].mxu1 }
 0x3b9   : > { %v2483_v48 = vpop.f32.mrb[59].mxu1 }
 0x3ba   : > { %v1760_v49 = vadd.f32 %v2481_v46, %v3498_v32  ;;  %v2484_v52 = vadd.f32 %v2483_v48, %v2482_v41  ;;  %v1811_v55 = vpack.c.bf16 %v1801_v43, %v1800_v23 }
 0x3bc   : > { %v1786_v56 = vmul.f32 0.01, %v1760_v49  ;;  %v1763_v57 = vadd.f32 %v2484_v52, %v3498_v32  ;;  %2552 = vmatmul.mubr.bf16.gmra.mrb[72].mxu1 %v1811_v55 }
 0x3be   : > { %v1787_v58 = vmul.f32 0.01, %v1763_v57  ;;  %v2485_v27 = vpop.f32.mrb[60].mxu1  ;;  %v1802_v45 = vmax.f32 %v1760_v49, %v1786_v56 }
 0x3bf   : > { %v2486_v59 = vpop.f32.mrb[61].mxu1 }
 0x3c0   : > { %v1803_v61 = vmax.f32 %v1763_v57, %v1787_v58  ;;  %v2487_v62 = vadd.f32 %v2486_v59, %v2485_v27  ;;  %v2488_v2 = vpop.f32.mrb[62].mxu1 }
 0x3c1   : > { %v2489_v34 = vpop.f32.mrb[63].mxu1 }
 0x3c2   : > { %v1768_v35 = vadd.f32 %v2487_v62, %v3498_v32  ;;  %v2490_v24 = vadd.f32 %v2489_v34, %v2488_v2  ;;  %v1812_v47 = vpack.c.bf16 %v1803_v61, %v1802_v45 }
 0x3c4   : > { %v1788_v50 = vmul.f32 0.01, %v1768_v35  ;;  %v1771_v53 = vadd.f32 %v2490_v24, %v3498_v32  ;;  %2555 = vmatprep.mubr.bf16.mxu1 %v1812_v47 }
 0x3c6   : > { %v1789_v0 = vmul.f32 0.01, %v1771_v53  ;;  %v1804_v54 = vmax.f32 %v1768_v35, %v1788_v50 }
 0x3c8   : > { %v1805_v1 = vmax.f32 %v1771_v53, %v1789_v0 }
 0x3ca   : > { %v1813_v3 = vpack.c.bf16 %v1805_v1, %v1804_v54 }
 0x3cc   : > { %2556 = vmatmul.mubr.bf16.gmra.mrb[76].mxu1 %v1813_v3 }
 0x46f   : > { %v2545_v25 = vpop.f32.mrb[64].mxu1 }
 0x470   : > { %v1928_v5 = vadd.f32 %v2545_v25, %v3519_v4  ;;  %v1919_v26 = vpop.f32.mrb[65].mxu1 }
 0x471   : > { %v3523_v7 = vadd.f32 %v3519_v4, %v1919_v26  ;;  %v2546_v8 = vpop.f32.mrb[66].mxu1 }
 0x472   : > { %v1984_v32 = vsub.f32 0.0, %v1928_v5  ;;  %v1931_v37 = vadd.f32 %v2546_v8, %v3519_v4  ;;  %v1922_v9 = vpop.f32.mrb[67].mxu1 }
 0x473   : > { %v1982_v10 = vsub.f32 0.0, %v3523_v7  ;;  %v1923_v11 = vadd.f32 %v3519_v4, %v1922_v9 }
 0x474   : > { %v2002_v38 = vmul.f32 1.442695, %v1984_v32  ;;  %v1985_v15 = vsub.f32 0.0, %v1931_v37 }
 0x475   : > { %v1998_v28 = vmul.f32 1.442695, %v1982_v10  ;;  %v1983_v16 = vsub.f32 0.0, %v1923_v11 }
 0x476   : > { %2774 = vpow2.f32 %v2002_v38  ;;  %v2004_v29 = vmul.f32 1.442695, %v1985_v15 }
 0x477   : > { %2776 = vpow2.f32 %v1998_v28  ;;  %v2000_v13 = vmul.f32 1.442695, %v1983_v16 }
 0x478   : > { %2778 = vpow2.f32 %v2004_v29 }
 0x479   : > { %2780 = vpow2.f32 %v2000_v13 }
 0x47f   : > { %v2549_v14 = vpop.f32.mrb[68].mxu1 }
 0x480   : > { %v2775_v33 = vpop.eup %2774  ;;  %v3529_v63 = vadd.f32 %v2549_v14, %v3519_v4  ;;  %v1935_v6 = vpop.f32.mrb[69].mxu1 }
 0x481   : > { %v2777_v36 = vpop.eup %2776  ;;  %v2032_v60 = vadd.f32 1.0, %v2775_v33  ;;  %v3532_v12 = vadd.f32 %v3519_v4, %v1935_v6  ;;  %v2550_v17 = vpop.f32.mrb[70].mxu1 }
 0x482   : > { %v2779_v18 = vpop.eup %2778  ;;  %v2030_v19 = vadd.f32 1.0, %v2777_v36  ;;  %v1988_v51 = vsub.f32 0.0, %v3529_v63  ;;  %v3536_v30 = vadd.f32 %v2550_v17, %v3519_v4  ;;  %v1938_v31 = vpop.f32.mrb[71].mxu1 }
 0x483   : > { %v2781_v40 = vpop.eup %2780  ;;  %2782 = vrcp.f32 %v2032_v60  ;;  %v2033_v20 = vadd.f32 1.0, %v2779_v18  ;;  %v1986_v21 = vsub.f32 0.0, %v3532_v12  ;;  %v3540_v39 = vadd.f32 %v3519_v4, %v1938_v31 }
 0x484   : > { %2784 = vrcp.f32 %v2030_v19  ;;  %v2031_v44 = vadd.f32 1.0, %v2781_v40  ;;  %v2010_v22 = vmul.f32 1.442695, %v1988_v51  ;;  %v1989_v23 = vsub.f32 0.0, %v3536_v30 }
 0x485   : > { %2786 = vrcp.f32 %v2033_v20  ;;  %v2006_v43 = vmul.f32 1.442695, %v1986_v21  ;;  %v1987_v46 = vsub.f32 0.0, %v3540_v39 }
 0x486   : > { %2788 = vrcp.f32 %v2031_v44  ;;  %v2012_v41 = vmul.f32 1.442695, %v1989_v23 }
 0x487   : > { %2790 = vpow2.f32 %v2010_v22  ;;  %v2008_v48 = vmul.f32 1.442695, %v1987_v46 }
 0x488   : > { %2792 = vpow2.f32 %v2006_v43 }
 0x489   : > { %2794 = vpow2.f32 %v2012_v41 }
 0x48a   : > { %2796 = vpow2.f32 %v2008_v48 }
 0x48d   : > { %v2783_v49 = vpop.eup %2782 }
 0x48e   : > { %v2785_v52 = vpop.eup %2784  ;;  %v2081_v58 = vsel %vm2078_vm0, %v2783_v49, %v1928_v5 }
 0x48f   : > { %v2787_v55 = vpop.eup %2786  ;;  %v2553_v56 = vpop.f32.mrb[72].mxu1  ;;  %v2079_v62 = vsel %vm2078_vm0, %v2785_v52, %v3523_v7 }
 0x490   : > { %v2789_v57 = vpop.eup %2788  ;;  %v2082_v27 = vsel %vm2078_vm0, %v2787_v55, %v1931_v37  ;;  %v3556_v59 = vadd.f32 %v2553_v56, %v3519_v4  ;;  %v1951_v45 = vpop.f32.mrb[73].mxu1 }
 0x491   : > { %v2791_v61 = vpop.eup %2790  ;;  %v2378_v2 = vpack.c.bf16 %v2082_v27, %v2081_v58  ;;  %v2080_v34 = vsel %vm2078_vm0, %v2789_v57, %v1923_v11  ;;  %v3564_v35 = vadd.f32 %v3519_v4, %v1951_v45  ;;  %v2554_v24 = vpop.f32.mrb[74].mxu1 }
 0x492   : > { %v2793_v47 = vpop.eup %2792  ;;  %v2373_v50 = vpack.c.bf16 %v2080_v34, %v2079_v62  ;;  %v2036_v53 = vadd.f32 1.0, %v2791_v61  ;;  %v1992_v0 = vsub.f32 0.0, %v3556_v59  ;;  %v3568_v54 = vadd.f32 %v2554_v24, %v3519_v4  ;;  %v1954_v1 = vpop.f32.mrb[75].mxu1 }
 0x493   : > { %v2795_v3 = vpop.eup %2794  ;;  %2410 = vst [vmem:[%s3551_s12 + $0x8] sm:$0xff] %v2378_v2   ;;  %v2034_v25 = vadd.f32 1.0, %v2793_v47  ;;  %v1990_v5 = vsub.f32 0.0, %v3564_v35  ;;  %v3573_v26 = vadd.f32 %v3519_v4, %v1954_v1 }
 0x494   : > { %v2797_v7 = vpop.eup %2796  ;;  %2374 = vst [vmem:[%s3551_s12] sm:$0xff] %v2373_v50   ;;  %2798 = vrcp.f32 %v2036_v53  ;;  %v2037_v8 = vadd.f32 1.0, %v2795_v3  ;;  %v2018_v32 = vmul.f32 1.442695, %v1992_v0  ;;  %v1993_v37 = vsub.f32 0.0, %v3568_v54 }
 0x495   : > { %2800 = vrcp.f32 %v2034_v25  ;;  %v2035_v9 = vadd.f32 1.0, %v2797_v7  ;;  %v2014_v10 = vmul.f32 1.442695, %v1990_v5  ;;  %v1991_v11 = vsub.f32 0.0, %v3573_v26 }
 0x496   : > { %2802 = vrcp.f32 %v2037_v8  ;;  %v2020_v38 = vmul.f32 1.442695, %v1993_v37 }
 0x497   : > { %2804 = vrcp.f32 %v2035_v9  ;;  %v2016_v15 = vmul.f32 1.442695, %v1991_v11 }
 0x498   : > { %2806 = vpow2.f32 %v2018_v32 }
 0x499   : > { %2808 = vpow2.f32 %v2014_v10 }
 0x49a   : > { %2810 = vpow2.f32 %v2020_v38 }
 0x49b   : > { %2812 = vpow2.f32 %v2016_v15 }
 0x49e   : > { %v2799_v28 = vpop.eup %2798 }
 0x49f   : > { %v2801_v16 = vpop.eup %2800  ;;  %v2557_v29 = vpop.f32.mrb[76].mxu1  ;;  %v2085_v36 = vsel %vm2078_vm0, %v2799_v28, %v3529_v63 }
 0x4a0   : > { %v2803_v13 = vpop.eup %2802  ;;  %v3579_v14 = vadd.f32 %v2557_v29, %v3519_v4  ;;  %v1967_v33 = vpop.f32.mrb[77].mxu1  ;;  %v2083_v60 = vsel %vm2078_vm0, %v2801_v16, %v3532_v12 }
 0x4a1   : > { %v2805_v6 = vpop.eup %2804  ;;  %v2086_v17 = vsel %vm2078_vm0, %v2803_v13, %v3536_v30  ;;  %v3591_v18 = vadd.f32 %v3519_v4, %v1967_v33  ;;  %v2558_v19 = vpop.f32.mrb[78].mxu1 }
 0x4a2   : > { %v2807_v51 = vpop.eup %2806  ;;  %v2388_v31 = vpack.c.bf16 %v2086_v17, %v2085_v36  ;;  %v2084_v63 = vsel %vm2078_vm0, %v2805_v6, %v3540_v39  ;;  %v1996_v40 = vsub.f32 0.0, %v3579_v14  ;;  %v1979_v12 = vadd.f32 %v2558_v19, %v3519_v4  ;;  %v1970_v20 = vpop.f32.mrb[79].mxu1 }
 0x4a3   : > { %v2809_v21 = vpop.eup %2808  ;;  %v2383_v44 = vpack.c.bf16 %v2084_v63, %v2083_v60  ;;  %v2040_v22 = vadd.f32 1.0, %v2807_v51  ;;  %v1994_v30 = vsub.f32 0.0, %v3591_v18  ;;  %v1971_v23 = vadd.f32 %v3519_v4, %v1970_v20 }
 0x4a4   : > { %v2811_v43 = vpop.eup %2810  ;;  %2412 = vst [vmem:[%s3551_s12 + $0x18] sm:$0xff] %v2388_v31   ;;  %v2038_v46 = vadd.f32 1.0, %v2809_v21  ;;  %v1997_v41 = vsub.f32 0.0, %v1979_v12  ;;  %v2026_v49 = vmul.f32 1.442695, %v1996_v40 }
 0x4a5   : > { %v2813_v48 = vpop.eup %2812  ;;  %2411 = vst [vmem:[%s3551_s12 + $0x10] sm:$0xff] %v2383_v44   ;;  %2814 = vrcp.f32 %v2040_v22  ;;  %v2041_v39 = vadd.f32 1.0, %v2811_v43  ;;  %v1995_v52 = vsub.f32 0.0, %v1971_v23  ;;  %v2022_v56 = vmul.f32 1.442695, %v1994_v30 }
 0x4a6   : > { %2816 = vrcp.f32 %v2038_v46  ;;  %v2039_v55 = vadd.f32 1.0, %v2813_v48  ;;  %v2028_v57 = vmul.f32 1.442695, %v1997_v41 }
 0x4a7   : > { %2818 = vrcp.f32 %v2041_v39  ;;  %v2024_v58 = vmul.f32 1.442695, %v1995_v52 }
 0x4a8   : > { %2820 = vrcp.f32 %v2039_v55 }
 0x4a9   : > { %2822 = vpow2.f32 %v2026_v49 }
 0x4aa   : > { %2824 = vpow2.f32 %v2022_v56 }
 0x4ab   : > { %2826 = vpow2.f32 %v2028_v57 }
 0x4ac   : > { %2828 = vpow2.f32 %v2024_v58 }
 0x4af   : > { %v2815_v4 = vpop.eup %2814 }
 0x4b0   : > { %v2817_v27 = vpop.eup %2816  ;;  %v2089_v62 = vsel %vm2078_vm0, %v2815_v4, %v3556_v59 }
 0x4b1   : > { %v2819_v45 = vpop.eup %2818  ;;  %v2087_v24 = vsel %vm2078_vm0, %v2817_v27, %v3564_v35 }
 0x4b2   : > { %v2821_v61 = vpop.eup %2820  ;;  %v2090_v2 = vsel %vm2078_vm0, %v2819_v45, %v3568_v54 }
 0x4b3   : > { %v2823_v34 = vpop.eup %2822  ;;  %v2398_v47 = vpack.c.bf16 %v2090_v2, %v2089_v62  ;;  %v2088_v50 = vsel %vm2078_vm0, %v2821_v61, %v3573_v26 }
 0x4b4   : > { %v2825_v53 = vpop.eup %2824  ;;  %v2393_v0 = vpack.c.bf16 %v2088_v50, %v2087_v24  ;;  %v2044_v1 = vadd.f32 1.0, %v2823_v34 }
 0x4b5   : > { %v2827_v3 = vpop.eup %2826  ;;  %2414 = vst [vmem:[%s3551_s12 + $0x28] sm:$0xff] %v2398_v47   ;;  %v2042_v59 = vadd.f32 1.0, %v2825_v53 }
 0x4b6   : > { %v2829_v25 = vpop.eup %2828  ;;  %2413 = vst [vmem:[%s3551_s12 + $0x20] sm:$0xff] %v2393_v0   ;;  %2830 = vrcp.f32 %v2044_v1  ;;  %v2045_v54 = vadd.f32 1.0, %v2827_v3 }
 0x4b7   : > { %2832 = vrcp.f32 %v2042_v59  ;;  %v2043_v5 = vadd.f32 1.0, %v2829_v25 }
 0x4b8   : > { %2834 = vrcp.f32 %v2045_v54 }
 0x4b9   : > { %2836 = vrcp.f32 %v2043_v5 }
 0x4c0   : > { %v2831_v35 = vpop.eup %2830 }
 0x4c1   : > { %v2833_v7 = vpop.eup %2832  ;;  %v2093_v32 = vsel %vm2078_vm0, %v2831_v35, %v3579_v14 }
 0x4c2   : > { %v2835_v8 = vpop.eup %2834  ;;  %v2091_v9 = vsel %vm2078_vm0, %v2833_v7, %v3591_v18 }
 0x4c3   : > { %v2837_v26 = vpop.eup %2836  ;;  %v2094_v37 = vsel %vm2078_vm0, %v2835_v8, %v1979_v12 }
 0x4c4   : > { %v2408_v10 = vpack.c.bf16 %v2094_v37, %v2093_v32  ;;  %v2092_v11 = vsel %vm2078_vm0, %v2837_v26, %v1971_v23 }
 0x4c5   : > { %v2403_v38 = vpack.c.bf16 %v2092_v11, %v2091_v9 }
 0x4c6   : > { %2416 = vst [vmem:[%s3551_s12 + $0x38] sm:$0xff] %v2408_v10  }
 0x4c7   : > { %2415 = vst [vmem:[%s3551_s12 + $0x30] sm:$0xff] %v2403_v38  }
 0x4c8 PF: > { %s19_s30 = sadd.s32 1, %s2844_s30  }
 0x4c9   : > { %p16_p4 = scmp.ge.s32.totalorder %s19_s30, 4  }
 0x4cb   :  { %18 = sbr.rel (!%p16_p4) target bundleno = 1 (0x1), region = 86 }

</bundles_post_ra>
